<compile_context>
chip_gen: v7x
topology: tpu7x:2x2x1
jax: 0.10.0
libtpu: 0.0.40
codegen_flags: <defaults>
</compile_context>

<pallas_src>
import functools

import jax
import jax.numpy as jnp
import numpy as np
from jax.experimental import pallas as pl
from jax.experimental.pallas import tpu as pltpu


def _pvlstm_kernel(x_ref,                 # (T*Bp, I) time-major, batch padded
                   wih0_ref, b0_ref,      # layer 0 input path: (I,4H), (1,4H) f32
                   wh1_ref,               # fused recurrent: [whh0 | wih1] (H,8H) bf16
                   whh1_ref,              # layer 1 recurrent (H,4H) bf16
                   b1_ref,                # (1,4H) f32
                   wfc_ref, bfc_ref,      # head: (H,O), (1,O) f32
                   out_ref,               # (B, O)
                   *, B, Bp, T, H):
    f32 = jnp.float32
    bf16 = jnp.bfloat16

    # ---- one-shot layer-0 input projection for every time step -------------
    # (T*Bp, I) @ (I, 4H) -> (T*Bp, 4H); rows [t*Bp:(t+1)*Bp] == step t, and
    # each such slice is exactly one aligned (8, 128) vreg block.
    xw0 = (jnp.dot(x_ref[...], wih0_ref[...], preferred_element_type=f32)
           + b0_ref[...])

    wh1 = wh1_ref[...]      # bf16 (H, 8H)
    whh1 = whh1_ref[...]    # bf16 (H, 4H)
    b1 = b1_ref[...]

    def cell_tail(g, c):
        # One full-width sigmoid over the packed (Bp, 4H) gates; tanh only
        # where needed.  Gate order (i, f, g, o) as in torch.nn.LSTM.
        s = jax.nn.sigmoid(g)
        i = s[:, 0 * H:1 * H]
        f = s[:, 1 * H:2 * H]
        o = s[:, 3 * H:4 * H]
        gg = jnp.tanh(g[:, 2 * H:3 * H])
        c_new = f * c + i * gg
        h_new = o * jnp.tanh(c_new)
        return h_new, c_new

    h1 = jnp.zeros((Bp, H), f32)
    c1 = jnp.zeros((Bp, H), f32)
    h2 = jnp.zeros((Bp, H), f32)
    c2 = jnp.zeros((Bp, H), f32)

    # Skewed, statically-unrolled recurrence: iteration t advances layer 0 to
    # step t and layer 1 to step t-1.  Only the wide h1 matmul + one cell_tail
    # sit on the serial critical path; layer 1 trails and never blocks it.
    for t in range(T + 1):
        if t == 0:
            g0 = xw0[0:Bp, :]                       # h1_{-1} == 0
        else:
            # One wide push from h1_{t-1}: lanes [0,4H) -> layer-0 step t,
            # lanes [4H,8H) -> layer-1 step t-1.
            gc = jnp.dot(h1.astype(bf16), wh1, preferred_element_type=f32)

            # ---- layer 1, step t-1 (lagged; off the h1 chain) ----
            g1 = (gc[:, 4 * H:8 * H] + b1
                  + jnp.dot(h2.astype(bf16), whh1, preferred_element_type=f32))
            h2, c2 = cell_tail(g1, c2)
            if t == T:
                break                                # epilogue: last layer-1 cell
            g0 = xw0[t * Bp:(t + 1) * Bp, :] + gc[:, 0:4 * H]

        # ---- layer 0, step t (serial critical path) ----
        h1, c1 = cell_tail(g0, c1)

    # FC head on the final top-layer hidden state (== PyTorch hidden[-1]).
    out = (jnp.dot(h2, wfc_ref[...], preferred_element_type=f32)
           + bfc_ref[...])
    out_ref[...] = out[:B, :].astype(out_ref.dtype)


@jax.jit
def pvlstm_forward(x, kparams):
    """x: (B, T, I) batch_first, like the PyTorch module. Returns (B, O)."""
    B, T, I = x.shape
    H = kparams["whh1"].shape[0]
    O = kparams["wfc"].shape[1]
    Bp = ((B + 7) // 8) * 8   # pad batch to a full sublane group

    # Only x-dependent prep stays in the jitted wrapper: time-major flatten +
    # zero-pad the batch so every per-step slice in the kernel is vreg-aligned.
    x_tm = jnp.pad(jnp.transpose(x, (1, 0, 2)), ((0, 0), (0, Bp - B), (0, 0)))
    x_tm = x_tm.reshape(T * Bp, I)

    kernel = functools.partial(_pvlstm_kernel, B=B, Bp=Bp, T=T, H=H)
    vmem = pl.BlockSpec(memory_space=pltpu.MemorySpace.VMEM)  # whole-array, VMEM

    return pl.pallas_call(
        kernel,
        out_shape=jax.ShapeDtypeStruct((B, O), jnp.float32),
        in_specs=[vmem] * 8,
        out_specs=vmem,
    )(x_tm,
      kparams["wih0"], kparams["b0"],
      kparams["wh1"], kparams["whh1"], kparams["b1"],
      kparams["wfc"], kparams["bfc"])


def init_params(key, input_size, hidden_size, output_size):
    """Deterministic init, PyTorch-style U(-1/sqrt(H), 1/sqrt(H)).

    Weights are stored pre-transposed ((in_dim, 4H) / (H, O)) and the two LSTM
    biases per layer are pre-summed.  These raw f32 params feed the reference.
    """
    H = hidden_size
    k = 1.0 / np.sqrt(H)
    keys = jax.random.split(key, 10)
    u = lambda kk, shape: jax.random.uniform(kk, shape, jnp.float32, -k, k)
    return {
        "wih0": u(keys[0], (input_size, 4 * H)),
        "whh0": u(keys[1], (H, 4 * H)),
        "b0":   u(keys[2], (1, 4 * H)) + u(keys[3], (1, 4 * H)),
        "wih1": u(keys[4], (H, 4 * H)),
        "whh1": u(keys[5], (H, 4 * H)),
        "b1":   u(keys[6], (1, 4 * H)) + u(keys[7], (1, 4 * H)),
        "wfc":  u(keys[8], (H, output_size)),
        "bfc":  u(keys[9], (1, output_size)),
    }


def prepare_kernel_params(p):
    """ONE-TIME prep (outside the jitted forward): fuse layer-1/layer-0
    recurrent weights into the skewed wide matrix and pre-cast to bf16."""
    return {
        "wih0": p["wih0"],                                             # f32 (I,4H)
        "b0":   p["b0"],                                               # f32 (1,4H)
        # lanes [0,4H): whh0 (layer-0 recurrent); lanes [4H,8H): wih1 (layer-1 input)
        "wh1":  jnp.concatenate([p["whh0"], p["wih1"]],
                                axis=1).astype(jnp.bfloat16),          # bf16 (H,8H)
        "whh1": p["whh1"].astype(jnp.bfloat16),                        # bf16 (H,4H)
        "b1":   p["b1"],                                               # f32 (1,4H)
        "wfc":  p["wfc"],                                              # f32 (H,O)
        "bfc":  p["bfc"],                                              # f32 (1,O)
    }


def pvlstm_reference(x, params):
    """Pure-JAX reference of the same forward pass (for sanity checking)."""
    B, T, I = x.shape
    H = params["whh0"].shape[0]

    def cell(x_in, h, c, w_ih, w_hh, b):
        g = x_in @ w_ih + h @ w_hh + b
        i = jax.nn.sigmoid(g[:, 0 * H:1 * H])
        f = jax.nn.sigmoid(g[:, 1 * H:2 * H])
        gg = jnp.tanh(g[:, 2 * H:3 * H])
        o = jax.nn.sigmoid(g[:, 3 * H:4 * H])
        c = f * c + i * gg
        h = o * jnp.tanh(c)
        return h, c

    h1 = jnp.zeros((B, H), jnp.float32)
    c1 = jnp.zeros((B, H), jnp.float32)
    h2 = jnp.zeros((B, H), jnp.float32)
    c2 = jnp.zeros((B, H), jnp.float32)
    for t in range(T):
        xt = x[:, t, :]
        h1, c1 = cell(xt, h1, c1, params["wih0"], params["whh0"], params["b0"])
        h2, c2 = cell(h1, h2, c2, params["wih1"], params["whh1"], params["b1"])
    return h2 @ params["wfc"] + params["bfc"]


if __name__ == "__main__":
    # Small shapes consistent with the module's forward:
    #   x: (batch=2, seq=8, input_size=3); hidden=32; layers=2; output=24
    B, T, I, H, O = 2, 8, 3, 32, 24

    key = jax.random.PRNGKey(0)
    kx, kp = jax.random.split(key)
    x = jax.random.normal(kx, (B, T, I), dtype=jnp.float32)

    params = init_params(kp, I, H, O)            # raw f32 (reference)
    kparams = prepare_kernel_params(params)      # one-time kernel weight prep

    out = pvlstm_forward(x, kparams)
    out = jax.block_until_ready(out)

    ref = pvlstm_reference(x, params)
    np.testing.assert_allclose(np.asarray(out), np.asarray(ref),
                               rtol=1e-2, atol=1e-2)

    assert out.shape == (B, O)
    print("KERNEL_OK")
</pallas_src>

<mosaic_0001>
module attributes {stable_mosaic.version = 11 : i64} {
  func.func @_pvlstm_kernel(%arg0: memref<64x3xf32, #tpu.memory_space<vmem>>, %arg1: memref<3x128xf32, #tpu.memory_space<vmem>>, %arg2: memref<1x128xf32, #tpu.memory_space<vmem>>, %arg3: memref<32x256xbf16, #tpu.memory_space<vmem>>, %arg4: memref<32x128xbf16, #tpu.memory_space<vmem>>, %arg5: memref<1x128xf32, #tpu.memory_space<vmem>>, %arg6: memref<32x24xf32, #tpu.memory_space<vmem>>, %arg7: memref<1x24xf32, #tpu.memory_space<vmem>>, %arg8: memref<2x24xf32, #tpu.memory_space<vmem>>) attributes {dimension_semantics = [], scalar_prefetch = 0 : i64, scratch_operands = 0 : i64, tpu.core_type = #tpu.core_type<tc>} {
    %c0 = arith.constant 0 : index
    %c0_0 = arith.constant 0 : index
    %0 = vector.load %arg0[%c0, %c0_0] : memref<64x3xf32, #tpu.memory_space<vmem>>, vector<64x3xf32>
    %c0_1 = arith.constant 0 : index
    %c0_2 = arith.constant 0 : index
    %1 = vector.load %arg1[%c0_1, %c0_2] : memref<3x128xf32, #tpu.memory_space<vmem>>, vector<3x128xf32>
    %cst = arith.constant dense<0.000000e+00> : vector<64x128xf32>
    %2 = tpu.matmul %0, %1, %cst {dimension_numbers = #tpu.dot_dimension_numbers<[1], [0], [0], [1], [0, 0, 1, 1], [], []>} : vector<64x3xf32>, vector<3x128xf32>, vector<64x128xf32> -> vector<64x128xf32>
    %c0_3 = arith.constant 0 : index
    %c0_4 = arith.constant 0 : index
    %3 = vector.load %arg2[%c0_3, %c0_4] : memref<1x128xf32, #tpu.memory_space<vmem>>, vector<1x128xf32>
    %4 = vector.broadcast %3 : vector<1x128xf32> to vector<64x128xf32>
    %5 = arith.addf %2, %4 : vector<64x128xf32>
    %c0_5 = arith.constant 0 : index
    %c0_6 = arith.constant 0 : index
    %6 = vector.load %arg3[%c0_5, %c0_6] : memref<32x256xbf16, #tpu.memory_space<vmem>>, vector<32x256xbf16>
    %c0_7 = arith.constant 0 : index
    %c0_8 = arith.constant 0 : index
    %7 = vector.load %arg4[%c0_7, %c0_8] : memref<32x128xbf16, #tpu.memory_space<vmem>>, vector<32x128xbf16>
    %c0_9 = arith.constant 0 : index
    %c0_10 = arith.constant 0 : index
    %8 = vector.load %arg5[%c0_9, %c0_10] : memref<1x128xf32, #tpu.memory_space<vmem>>, vector<1x128xf32>
    %cst_11 = arith.constant 0.000000e+00 : f32
    %9 = vector.broadcast %cst_11 : f32 to vector<8x32xf32>
    %cst_12 = arith.constant 0.000000e+00 : f32
    %10 = vector.broadcast %cst_12 : f32 to vector<8x32xf32>
    %cst_13 = arith.constant 0.000000e+00 : f32
    %11 = vector.broadcast %cst_13 : f32 to vector<8x32xf32>
    %12 = vector.extract_strided_slice %5 {offsets = [0, 0], sizes = [8, 128], strides = [1, 1]} : vector<64x128xf32> to vector<8x128xf32>
    %13 = arith.negf %12 : vector<8x128xf32>
    %14 = math.exp %13 : vector<8x128xf32>
    %cst_14 = arith.constant 1.000000e+00 : f32
    %15 = vector.broadcast %cst_14 : f32 to vector<8x128xf32>
    %16 = arith.addf %15, %14 : vector<8x128xf32>
    %17 = arith.divf %15, %16 : vector<8x128xf32>
    %18 = vector.extract_strided_slice %17 {offsets = [0, 0], sizes = [8, 32], strides = [1, 1]} : vector<8x128xf32> to vector<8x32xf32>
    %19 = vector.extract_strided_slice %17 {offsets = [0, 32], sizes = [8, 32], strides = [1, 1]} : vector<8x128xf32> to vector<8x32xf32>
    %20 = vector.extract_strided_slice %17 {offsets = [0, 96], sizes = [8, 32], strides = [1, 1]} : vector<8x128xf32> to vector<8x32xf32>
    %21 = vector.extract_strided_slice %12 {offsets = [0, 64], sizes = [8, 32], strides = [1, 1]} : vector<8x128xf32> to vector<8x32xf32>
    %22 = math.tanh %21 : vector<8x32xf32>
    %23 = arith.mulf %19, %9 : vector<8x32xf32>
    %24 = arith.mulf %18, %22 : vector<8x32xf32>
    %25 = arith.addf %23, %24 : vector<8x32xf32>
    %26 = math.tanh %25 : vector<8x32xf32>
    %27 = arith.mulf %20, %26 : vector<8x32xf32>
    %28 = arith.truncf %27 : vector<8x32xf32> to vector<8x32xbf16>
    %cst_15 = arith.constant dense<0.000000e+00> : vector<8x256xf32>
    %29 = tpu.matmul %28, %6, %cst_15 {dimension_numbers = #tpu.dot_dimension_numbers<[1], [0], [0], [1], [0, 0, 1, 1], [], []>} : vector<8x32xbf16>, vector<32x256xbf16>, vector<8x256xf32> -> vector<8x256xf32>
    %30 = vector.extract_strided_slice %29 {offsets = [0, 128], sizes = [8, 128], strides = [1, 1]} : vector<8x256xf32> to vector<8x128xf32>
    %31 = vector.broadcast %8 : vector<1x128xf32> to vector<8x128xf32>
    %32 = arith.addf %30, %31 : vector<8x128xf32>
    %33 = arith.truncf %10 : vector<8x32xf32> to vector<8x32xbf16>
    %cst_16 = arith.constant dense<0.000000e+00> : vector<8x128xf32>
    %34 = tpu.matmul %33, %7, %cst_16 {dimension_numbers = #tpu.dot_dimension_numbers<[1], [0], [0], [1], [0, 0, 1, 1], [], []>} : vector<8x32xbf16>, vector<32x128xbf16>, vector<8x128xf32> -> vector<8x128xf32>
    %35 = arith.addf %32, %34 : vector<8x128xf32>
    %36 = arith.negf %35 : vector<8x128xf32>
    %37 = math.exp %36 : vector<8x128xf32>
    %cst_17 = arith.constant 1.000000e+00 : f32
    %38 = vector.broadcast %cst_17 : f32 to vector<8x128xf32>
    %39 = arith.addf %38, %37 : vector<8x128xf32>
    %40 = arith.divf %38, %39 : vector<8x128xf32>
    %41 = vector.extract_strided_slice %40 {offsets = [0, 0], sizes = [8, 32], strides = [1, 1]} : vector<8x128xf32> to vector<8x32xf32>
    %42 = vector.extract_strided_slice %40 {offsets = [0, 32], sizes = [8, 32], strides = [1, 1]} : vector<8x128xf32> to vector<8x32xf32>
    %43 = vector.extract_strided_slice %40 {offsets = [0, 96], sizes = [8, 32], strides = [1, 1]} : vector<8x128xf32> to vector<8x32xf32>
    %44 = vector.extract_strided_slice %35 {offsets = [0, 64], sizes = [8, 32], strides = [1, 1]} : vector<8x128xf32> to vector<8x32xf32>
    %45 = math.tanh %44 : vector<8x32xf32>
    %46 = arith.mulf %42, %11 : vector<8x32xf32>
    %47 = arith.mulf %41, %45 : vector<8x32xf32>
    %48 = arith.addf %46, %47 : vector<8x32xf32>
    %49 = math.tanh %48 : vector<8x32xf32>
    %50 = arith.mulf %43, %49 : vector<8x32xf32>
    %51 = vector.extract_strided_slice %5 {offsets = [8, 0], sizes = [8, 128], strides = [1, 1]} : vector<64x128xf32> to vector<8x128xf32>
    %52 = vector.extract_strided_slice %29 {offsets = [0, 0], sizes = [8, 128], strides = [1, 1]} : vector<8x256xf32> to vector<8x128xf32>
    %53 = arith.addf %51, %52 : vector<8x128xf32>
    %54 = arith.negf %53 : vector<8x128xf32>
    %55 = math.exp %54 : vector<8x128xf32>
    %cst_18 = arith.constant 1.000000e+00 : f32
    %56 = vector.broadcast %cst_18 : f32 to vector<8x128xf32>
    %57 = arith.addf %56, %55 : vector<8x128xf32>
    %58 = arith.divf %56, %57 : vector<8x128xf32>
    %59 = vector.extract_strided_slice %58 {offsets = [0, 0], sizes = [8, 32], strides = [1, 1]} : vector<8x128xf32> to vector<8x32xf32>
    %60 = vector.extract_strided_slice %58 {offsets = [0, 32], sizes = [8, 32], strides = [1, 1]} : vector<8x128xf32> to vector<8x32xf32>
    %61 = vector.extract_strided_slice %58 {offsets = [0, 96], sizes = [8, 32], strides = [1, 1]} : vector<8x128xf32> to vector<8x32xf32>
    %62 = vector.extract_strided_slice %53 {offsets = [0, 64], sizes = [8, 32], strides = [1, 1]} : vector<8x128xf32> to vector<8x32xf32>
    %63 = math.tanh %62 : vector<8x32xf32>
    %64 = arith.mulf %60, %25 : vector<8x32xf32>
    %65 = arith.mulf %59, %63 : vector<8x32xf32>
    %66 = arith.addf %64, %65 : vector<8x32xf32>
    %67 = math.tanh %66 : vector<8x32xf32>
    %68 = arith.mulf %61, %67 : vector<8x32xf32>
    %69 = arith.truncf %68 : vector<8x32xf32> to vector<8x32xbf16>
    %cst_19 = arith.constant dense<0.000000e+00> : vector<8x256xf32>
    %70 = tpu.matmul %69, %6, %cst_19 {dimension_numbers = #tpu.dot_dimension_numbers<[1], [0], [0], [1], [0, 0, 1, 1], [], []>} : vector<8x32xbf16>, vector<32x256xbf16>, vector<8x256xf32> -> vector<8x256xf32>
    %71 = vector.extract_strided_slice %70 {offsets = [0, 128], sizes = [8, 128], strides = [1, 1]} : vector<8x256xf32> to vector<8x128xf32>
    %72 = vector.broadcast %8 : vector<1x128xf32> to vector<8x128xf32>
    %73 = arith.addf %71, %72 : vector<8x128xf32>
    %74 = arith.truncf %50 : vector<8x32xf32> to vector<8x32xbf16>
    %cst_20 = arith.constant dense<0.000000e+00> : vector<8x128xf32>
    %75 = tpu.matmul %74, %7, %cst_20 {dimension_numbers = #tpu.dot_dimension_numbers<[1], [0], [0], [1], [0, 0, 1, 1], [], []>} : vector<8x32xbf16>, vector<32x128xbf16>, vector<8x128xf32> -> vector<8x128xf32>
    %76 = arith.addf %73, %75 : vector<8x128xf32>
    %77 = arith.negf %76 : vector<8x128xf32>
    %78 = math.exp %77 : vector<8x128xf32>
    %cst_21 = arith.constant 1.000000e+00 : f32
    %79 = vector.broadcast %cst_21 : f32 to vector<8x128xf32>
    %80 = arith.addf %79, %78 : vector<8x128xf32>
    %81 = arith.divf %79, %80 : vector<8x128xf32>
    %82 = vector.extract_strided_slice %81 {offsets = [0, 0], sizes = [8, 32], strides = [1, 1]} : vector<8x128xf32> to vector<8x32xf32>
    %83 = vector.extract_strided_slice %81 {offsets = [0, 32], sizes = [8, 32], strides = [1, 1]} : vector<8x128xf32> to vector<8x32xf32>
    %84 = vector.extract_strided_slice %81 {offsets = [0, 96], sizes = [8, 32], strides = [1, 1]} : vector<8x128xf32> to vector<8x32xf32>
    %85 = vector.extract_strided_slice %76 {offsets = [0, 64], sizes = [8, 32], strides = [1, 1]} : vector<8x128xf32> to vector<8x32xf32>
    %86 = math.tanh %85 : vector<8x32xf32>
    %87 = arith.mulf %83, %48 : vector<8x32xf32>
    %88 = arith.mulf %82, %86 : vector<8x32xf32>
    %89 = arith.addf %87, %88 : vector<8x32xf32>
    %90 = math.tanh %89 : vector<8x32xf32>
    %91 = arith.mulf %84, %90 : vector<8x32xf32>
    %92 = vector.extract_strided_slice %5 {offsets = [16, 0], sizes = [8, 128], strides = [1, 1]} : vector<64x128xf32> to vector<8x128xf32>
    %93 = vector.extract_strided_slice %70 {offsets = [0, 0], sizes = [8, 128], strides = [1, 1]} : vector<8x256xf32> to vector<8x128xf32>
    %94 = arith.addf %92, %93 : vector<8x128xf32>
    %95 = arith.negf %94 : vector<8x128xf32>
    %96 = math.exp %95 : vector<8x128xf32>
    %cst_22 = arith.constant 1.000000e+00 : f32
    %97 = vector.broadcast %cst_22 : f32 to vector<8x128xf32>
    %98 = arith.addf %97, %96 : vector<8x128xf32>
    %99 = arith.divf %97, %98 : vector<8x128xf32>
    %100 = vector.extract_strided_slice %99 {offsets = [0, 0], sizes = [8, 32], strides = [1, 1]} : vector<8x128xf32> to vector<8x32xf32>
    %101 = vector.extract_strided_slice %99 {offsets = [0, 32], sizes = [8, 32], strides = [1, 1]} : vector<8x128xf32> to vector<8x32xf32>
    %102 = vector.extract_strided_slice %99 {offsets = [0, 96], sizes = [8, 32], strides = [1, 1]} : vector<8x128xf32> to vector<8x32xf32>
    %103 = vector.extract_strided_slice %94 {offsets = [0, 64], sizes = [8, 32], strides = [1, 1]} : vector<8x128xf32> to vector<8x32xf32>
    %104 = math.tanh %103 : vector<8x32xf32>
    %105 = arith.mulf %101, %66 : vector<8x32xf32>
    %106 = arith.mulf %100, %104 : vector<8x32xf32>
    %107 = arith.addf %105, %106 : vector<8x32xf32>
    %108 = math.tanh %107 : vector<8x32xf32>
    %109 = arith.mulf %102, %108 : vector<8x32xf32>
    %110 = arith.truncf %109 : vector<8x32xf32> to vector<8x32xbf16>
    %cst_23 = arith.constant dense<0.000000e+00> : vector<8x256xf32>
    %111 = tpu.matmul %110, %6, %cst_23 {dimension_numbers = #tpu.dot_dimension_numbers<[1], [0], [0], [1], [0, 0, 1, 1], [], []>} : vector<8x32xbf16>, vector<32x256xbf16>, vector<8x256xf32> -> vector<8x256xf32>
    %112 = vector.extract_strided_slice %111 {offsets = [0, 128], sizes = [8, 128], strides = [1, 1]} : vector<8x256xf32> to vector<8x128xf32>
    %113 = vector.broadcast %8 : vector<1x128xf32> to vector<8x128xf32>
    %114 = arith.addf %112, %113 : vector<8x128xf32>
    %115 = arith.truncf %91 : vector<8x32xf32> to vector<8x32xbf16>
    %cst_24 = arith.constant dense<0.000000e+00> : vector<8x128xf32>
    %116 = tpu.matmul %115, %7, %cst_24 {dimension_numbers = #tpu.dot_dimension_numbers<[1], [0], [0], [1], [0, 0, 1, 1], [], []>} : vector<8x32xbf16>, vector<32x128xbf16>, vector<8x128xf32> -> vector<8x128xf32>
    %117 = arith.addf %114, %116 : vector<8x128xf32>
    %118 = arith.negf %117 : vector<8x128xf32>
    %119 = math.exp %118 : vector<8x128xf32>
    %cst_25 = arith.constant 1.000000e+00 : f32
    %120 = vector.broadcast %cst_25 : f32 to vector<8x128xf32>
    %121 = arith.addf %120, %119 : vector<8x128xf32>
    %122 = arith.divf %120, %121 : vector<8x128xf32>
    %123 = vector.extract_strided_slice %122 {offsets = [0, 0], sizes = [8, 32], strides = [1, 1]} : vector<8x128xf32> to vector<8x32xf32>
    %124 = vector.extract_strided_slice %122 {offsets = [0, 32], sizes = [8, 32], strides = [1, 1]} : vector<8x128xf32> to vector<8x32xf32>
    %125 = vector.extract_strided_slice %122 {offsets = [0, 96], sizes = [8, 32], strides = [1, 1]} : vector<8x128xf32> to vector<8x32xf32>
    %126 = vector.extract_strided_slice %117 {offsets = [0, 64], sizes = [8, 32], strides = [1, 1]} : vector<8x128xf32> to vector<8x32xf32>
    %127 = math.tanh %126 : vector<8x32xf32>
    %128 = arith.mulf %124, %89 : vector<8x32xf32>
    %129 = arith.mulf %123, %127 : vector<8x32xf32>
    %130 = arith.addf %128, %129 : vector<8x32xf32>
    %131 = math.tanh %130 : vector<8x32xf32>
    %132 = arith.mulf %125, %131 : vector<8x32xf32>
    %133 = vector.extract_strided_slice %5 {offsets = [24, 0], sizes = [8, 128], strides = [1, 1]} : vector<64x128xf32> to vector<8x128xf32>
    %134 = vector.extract_strided_slice %111 {offsets = [0, 0], sizes = [8, 128], strides = [1, 1]} : vector<8x256xf32> to vector<8x128xf32>
    %135 = arith.addf %133, %134 : vector<8x128xf32>
    %136 = arith.negf %135 : vector<8x128xf32>
    %137 = math.exp %136 : vector<8x128xf32>
    %cst_26 = arith.constant 1.000000e+00 : f32
    %138 = vector.broadcast %cst_26 : f32 to vector<8x128xf32>
    %139 = arith.addf %138, %137 : vector<8x128xf32>
    %140 = arith.divf %138, %139 : vector<8x128xf32>
    %141 = vector.extract_strided_slice %140 {offsets = [0, 0], sizes = [8, 32], strides = [1, 1]} : vector<8x128xf32> to vector<8x32xf32>
    %142 = vector.extract_strided_slice %140 {offsets = [0, 32], sizes = [8, 32], strides = [1, 1]} : vector<8x128xf32> to vector<8x32xf32>
    %143 = vector.extract_strided_slice %140 {offsets = [0, 96], sizes = [8, 32], strides = [1, 1]} : vector<8x128xf32> to vector<8x32xf32>
    %144 = vector.extract_strided_slice %135 {offsets = [0, 64], sizes = [8, 32], strides = [1, 1]} : vector<8x128xf32> to vector<8x32xf32>
    %145 = math.tanh %144 : vector<8x32xf32>
    %146 = arith.mulf %142, %107 : vector<8x32xf32>
    %147 = arith.mulf %141, %145 : vector<8x32xf32>
    %148 = arith.addf %146, %147 : vector<8x32xf32>
    %149 = math.tanh %148 : vector<8x32xf32>
    %150 = arith.mulf %143, %149 : vector<8x32xf32>
    %151 = arith.truncf %150 : vector<8x32xf32> to vector<8x32xbf16>
    %cst_27 = arith.constant dense<0.000000e+00> : vector<8x256xf32>
    %152 = tpu.matmul %151, %6, %cst_27 {dimension_numbers = #tpu.dot_dimension_numbers<[1], [0], [0], [1], [0, 0, 1, 1], [], []>} : vector<8x32xbf16>, vector<32x256xbf16>, vector<8x256xf32> -> vector<8x256xf32>
    %153 = vector.extract_strided_slice %152 {offsets = [0, 128], sizes = [8, 128], strides = [1, 1]} : vector<8x256xf32> to vector<8x128xf32>
    %154 = vector.broadcast %8 : vector<1x128xf32> to vector<8x128xf32>
    %155 = arith.addf %153, %154 : vector<8x128xf32>
    %156 = arith.truncf %132 : vector<8x32xf32> to vector<8x32xbf16>
    %cst_28 = arith.constant dense<0.000000e+00> : vector<8x128xf32>
    %157 = tpu.matmul %156, %7, %cst_28 {dimension_numbers = #tpu.dot_dimension_numbers<[1], [0], [0], [1], [0, 0, 1, 1], [], []>} : vector<8x32xbf16>, vector<32x128xbf16>, vector<8x128xf32> -> vector<8x128xf32>
    %158 = arith.addf %155, %157 : vector<8x128xf32>
    %159 = arith.negf %158 : vector<8x128xf32>
    %160 = math.exp %159 : vector<8x128xf32>
    %cst_29 = arith.constant 1.000000e+00 : f32
    %161 = vector.broadcast %cst_29 : f32 to vector<8x128xf32>
    %162 = arith.addf %161, %160 : vector<8x128xf32>
    %163 = arith.divf %161, %162 : vector<8x128xf32>
    %164 = vector.extract_strided_slice %163 {offsets = [0, 0], sizes = [8, 32], strides = [1, 1]} : vector<8x128xf32> to vector<8x32xf32>
    %165 = vector.extract_strided_slice %163 {offsets = [0, 32], sizes = [8, 32], strides = [1, 1]} : vector<8x128xf32> to vector<8x32xf32>
    %166 = vector.extract_strided_slice %163 {offsets = [0, 96], sizes = [8, 32], strides = [1, 1]} : vector<8x128xf32> to vector<8x32xf32>
    %167 = vector.extract_strided_slice %158 {offsets = [0, 64], sizes = [8, 32], strides = [1, 1]} : vector<8x128xf32> to vector<8x32xf32>
    %168 = math.tanh %167 : vector<8x32xf32>
    %169 = arith.mulf %165, %130 : vector<8x32xf32>
    %170 = arith.mulf %164, %168 : vector<8x32xf32>
    %171 = arith.addf %169, %170 : vector<8x32xf32>
    %172 = math.tanh %171 : vector<8x32xf32>
    %173 = arith.mulf %166, %172 : vector<8x32xf32>
    %174 = vector.extract_strided_slice %5 {offsets = [32, 0], sizes = [8, 128], strides = [1, 1]} : vector<64x128xf32> to vector<8x128xf32>
    %175 = vector.extract_strided_slice %152 {offsets = [0, 0], sizes = [8, 128], strides = [1, 1]} : vector<8x256xf32> to vector<8x128xf32>
    %176 = arith.addf %174, %175 : vector<8x128xf32>
    %177 = arith.negf %176 : vector<8x128xf32>
    %178 = math.exp %177 : vector<8x128xf32>
    %cst_30 = arith.constant 1.000000e+00 : f32
    %179 = vector.broadcast %cst_30 : f32 to vector<8x128xf32>
    %180 = arith.addf %179, %178 : vector<8x128xf32>
    %181 = arith.divf %179, %180 : vector<8x128xf32>
    %182 = vector.extract_strided_slice %181 {offsets = [0, 0], sizes = [8, 32], strides = [1, 1]} : vector<8x128xf32> to vector<8x32xf32>
    %183 = vector.extract_strided_slice %181 {offsets = [0, 32], sizes = [8, 32], strides = [1, 1]} : vector<8x128xf32> to vector<8x32xf32>
    %184 = vector.extract_strided_slice %181 {offsets = [0, 96], sizes = [8, 32], strides = [1, 1]} : vector<8x128xf32> to vector<8x32xf32>
    %185 = vector.extract_strided_slice %176 {offsets = [0, 64], sizes = [8, 32], strides = [1, 1]} : vector<8x128xf32> to vector<8x32xf32>
    %186 = math.tanh %185 : vector<8x32xf32>
    %187 = arith.mulf %183, %148 : vector<8x32xf32>
    %188 = arith.mulf %182, %186 : vector<8x32xf32>
    %189 = arith.addf %187, %188 : vector<8x32xf32>
    %190 = math.tanh %189 : vector<8x32xf32>
    %191 = arith.mulf %184, %190 : vector<8x32xf32>
    %192 = arith.truncf %191 : vector<8x32xf32> to vector<8x32xbf16>
    %cst_31 = arith.constant dense<0.000000e+00> : vector<8x256xf32>
    %193 = tpu.matmul %192, %6, %cst_31 {dimension_numbers = #tpu.dot_dimension_numbers<[1], [0], [0], [1], [0, 0, 1, 1], [], []>} : vector<8x32xbf16>, vector<32x256xbf16>, vector<8x256xf32> -> vector<8x256xf32>
    %194 = vector.extract_strided_slice %193 {offsets = [0, 128], sizes = [8, 128], strides = [1, 1]} : vector<8x256xf32> to vector<8x128xf32>
    %195 = vector.broadcast %8 : vector<1x128xf32> to vector<8x128xf32>
    %196 = arith.addf %194, %195 : vector<8x128xf32>
    %197 = arith.truncf %173 : vector<8x32xf32> to vector<8x32xbf16>
    %cst_32 = arith.constant dense<0.000000e+00> : vector<8x128xf32>
    %198 = tpu.matmul %197, %7, %cst_32 {dimension_numbers = #tpu.dot_dimension_numbers<[1], [0], [0], [1], [0, 0, 1, 1], [], []>} : vector<8x32xbf16>, vector<32x128xbf16>, vector<8x128xf32> -> vector<8x128xf32>
    %199 = arith.addf %196, %198 : vector<8x128xf32>
    %200 = arith.negf %199 : vector<8x128xf32>
    %201 = math.exp %200 : vector<8x128xf32>
    %cst_33 = arith.constant 1.000000e+00 : f32
    %202 = vector.broadcast %cst_33 : f32 to vector<8x128xf32>
    %203 = arith.addf %202, %201 : vector<8x128xf32>
    %204 = arith.divf %202, %203 : vector<8x128xf32>
    %205 = vector.extract_strided_slice %204 {offsets = [0, 0], sizes = [8, 32], strides = [1, 1]} : vector<8x128xf32> to vector<8x32xf32>
    %206 = vector.extract_strided_slice %204 {offsets = [0, 32], sizes = [8, 32], strides = [1, 1]} : vector<8x128xf32> to vector<8x32xf32>
    %207 = vector.extract_strided_slice %204 {offsets = [0, 96], sizes = [8, 32], strides = [1, 1]} : vector<8x128xf32> to vector<8x32xf32>
    %208 = vector.extract_strided_slice %199 {offsets = [0, 64], sizes = [8, 32], strides = [1, 1]} : vector<8x128xf32> to vector<8x32xf32>
    %209 = math.tanh %208 : vector<8x32xf32>
    %210 = arith.mulf %206, %171 : vector<8x32xf32>
    %211 = arith.mulf %205, %209 : vector<8x32xf32>
    %212 = arith.addf %210, %211 : vector<8x32xf32>
    %213 = math.tanh %212 : vector<8x32xf32>
    %214 = arith.mulf %207, %213 : vector<8x32xf32>
    %215 = vector.extract_strided_slice %5 {offsets = [40, 0], sizes = [8, 128], strides = [1, 1]} : vector<64x128xf32> to vector<8x128xf32>
    %216 = vector.extract_strided_slice %193 {offsets = [0, 0], sizes = [8, 128], strides = [1, 1]} : vector<8x256xf32> to vector<8x128xf32>
    %217 = arith.addf %215, %216 : vector<8x128xf32>
    %218 = arith.negf %217 : vector<8x128xf32>
    %219 = math.exp %218 : vector<8x128xf32>
    %cst_34 = arith.constant 1.000000e+00 : f32
    %220 = vector.broadcast %cst_34 : f32 to vector<8x128xf32>
    %221 = arith.addf %220, %219 : vector<8x128xf32>
    %222 = arith.divf %220, %221 : vector<8x128xf32>
    %223 = vector.extract_strided_slice %222 {offsets = [0, 0], sizes = [8, 32], strides = [1, 1]} : vector<8x128xf32> to vector<8x32xf32>
    %224 = vector.extract_strided_slice %222 {offsets = [0, 32], sizes = [8, 32], strides = [1, 1]} : vector<8x128xf32> to vector<8x32xf32>
    %225 = vector.extract_strided_slice %222 {offsets = [0, 96], sizes = [8, 32], strides = [1, 1]} : vector<8x128xf32> to vector<8x32xf32>
    %226 = vector.extract_strided_slice %217 {offsets = [0, 64], sizes = [8, 32], strides = [1, 1]} : vector<8x128xf32> to vector<8x32xf32>
    %227 = math.tanh %226 : vector<8x32xf32>
    %228 = arith.mulf %224, %189 : vector<8x32xf32>
    %229 = arith.mulf %223, %227 : vector<8x32xf32>
    %230 = arith.addf %228, %229 : vector<8x32xf32>
    %231 = math.tanh %230 : vector<8x32xf32>
    %232 = arith.mulf %225, %231 : vector<8x32xf32>
    %233 = arith.truncf %232 : vector<8x32xf32> to vector<8x32xbf16>
    %cst_35 = arith.constant dense<0.000000e+00> : vector<8x256xf32>
    %234 = tpu.matmul %233, %6, %cst_35 {dimension_numbers = #tpu.dot_dimension_numbers<[1], [0], [0], [1], [0, 0, 1, 1], [], []>} : vector<8x32xbf16>, vector<32x256xbf16>, vector<8x256xf32> -> vector<8x256xf32>
    %235 = vector.extract_strided_slice %234 {offsets = [0, 128], sizes = [8, 128], strides = [1, 1]} : vector<8x256xf32> to vector<8x128xf32>
    %236 = vector.broadcast %8 : vector<1x128xf32> to vector<8x128xf32>
    %237 = arith.addf %235, %236 : vector<8x128xf32>
    %238 = arith.truncf %214 : vector<8x32xf32> to vector<8x32xbf16>
    %cst_36 = arith.constant dense<0.000000e+00> : vector<8x128xf32>
    %239 = tpu.matmul %238, %7, %cst_36 {dimension_numbers = #tpu.dot_dimension_numbers<[1], [0], [0], [1], [0, 0, 1, 1], [], []>} : vector<8x32xbf16>, vector<32x128xbf16>, vector<8x128xf32> -> vector<8x128xf32>
    %240 = arith.addf %237, %239 : vector<8x128xf32>
    %241 = arith.negf %240 : vector<8x128xf32>
    %242 = math.exp %241 : vector<8x128xf32>
    %cst_37 = arith.constant 1.000000e+00 : f32
    %243 = vector.broadcast %cst_37 : f32 to vector<8x128xf32>
    %244 = arith.addf %243, %242 : vector<8x128xf32>
    %245 = arith.divf %243, %244 : vector<8x128xf32>
    %246 = vector.extract_strided_slice %245 {offsets = [0, 0], sizes = [8, 32], strides = [1, 1]} : vector<8x128xf32> to vector<8x32xf32>
    %247 = vector.extract_strided_slice %245 {offsets = [0, 32], sizes = [8, 32], strides = [1, 1]} : vector<8x128xf32> to vector<8x32xf32>
    %248 = vector.extract_strided_slice %245 {offsets = [0, 96], sizes = [8, 32], strides = [1, 1]} : vector<8x128xf32> to vector<8x32xf32>
    %249 = vector.extract_strided_slice %240 {offsets = [0, 64], sizes = [8, 32], strides = [1, 1]} : vector<8x128xf32> to vector<8x32xf32>
    %250 = math.tanh %249 : vector<8x32xf32>
    %251 = arith.mulf %247, %212 : vector<8x32xf32>
    %252 = arith.mulf %246, %250 : vector<8x32xf32>
    %253 = arith.addf %251, %252 : vector<8x32xf32>
    %254 = math.tanh %253 : vector<8x32xf32>
    %255 = arith.mulf %248, %254 : vector<8x32xf32>
    %256 = vector.extract_strided_slice %5 {offsets = [48, 0], sizes = [8, 128], strides = [1, 1]} : vector<64x128xf32> to vector<8x128xf32>
    %257 = vector.extract_strided_slice %234 {offsets = [0, 0], sizes = [8, 128], strides = [1, 1]} : vector<8x256xf32> to vector<8x128xf32>
    %258 = arith.addf %256, %257 : vector<8x128xf32>
    %259 = arith.negf %258 : vector<8x128xf32>
    %260 = math.exp %259 : vector<8x128xf32>
    %cst_38 = arith.constant 1.000000e+00 : f32
    %261 = vector.broadcast %cst_38 : f32 to vector<8x128xf32>
    %262 = arith.addf %261, %260 : vector<8x128xf32>
    %263 = arith.divf %261, %262 : vector<8x128xf32>
    %264 = vector.extract_strided_slice %263 {offsets = [0, 0], sizes = [8, 32], strides = [1, 1]} : vector<8x128xf32> to vector<8x32xf32>
    %265 = vector.extract_strided_slice %263 {offsets = [0, 32], sizes = [8, 32], strides = [1, 1]} : vector<8x128xf32> to vector<8x32xf32>
    %266 = vector.extract_strided_slice %263 {offsets = [0, 96], sizes = [8, 32], strides = [1, 1]} : vector<8x128xf32> to vector<8x32xf32>
    %267 = vector.extract_strided_slice %258 {offsets = [0, 64], sizes = [8, 32], strides = [1, 1]} : vector<8x128xf32> to vector<8x32xf32>
    %268 = math.tanh %267 : vector<8x32xf32>
    %269 = arith.mulf %265, %230 : vector<8x32xf32>
    %270 = arith.mulf %264, %268 : vector<8x32xf32>
    %271 = arith.addf %269, %270 : vector<8x32xf32>
    %272 = math.tanh %271 : vector<8x32xf32>
    %273 = arith.mulf %266, %272 : vector<8x32xf32>
    %274 = arith.truncf %273 : vector<8x32xf32> to vector<8x32xbf16>
    %cst_39 = arith.constant dense<0.000000e+00> : vector<8x256xf32>
    %275 = tpu.matmul %274, %6, %cst_39 {dimension_numbers = #tpu.dot_dimension_numbers<[1], [0], [0], [1], [0, 0, 1, 1], [], []>} : vector<8x32xbf16>, vector<32x256xbf16>, vector<8x256xf32> -> vector<8x256xf32>
    %276 = vector.extract_strided_slice %275 {offsets = [0, 128], sizes = [8, 128], strides = [1, 1]} : vector<8x256xf32> to vector<8x128xf32>
    %277 = vector.broadcast %8 : vector<1x128xf32> to vector<8x128xf32>
    %278 = arith.addf %276, %277 : vector<8x128xf32>
    %279 = arith.truncf %255 : vector<8x32xf32> to vector<8x32xbf16>
    %cst_40 = arith.constant dense<0.000000e+00> : vector<8x128xf32>
    %280 = tpu.matmul %279, %7, %cst_40 {dimension_numbers = #tpu.dot_dimension_numbers<[1], [0], [0], [1], [0, 0, 1, 1], [], []>} : vector<8x32xbf16>, vector<32x128xbf16>, vector<8x128xf32> -> vector<8x128xf32>
    %281 = arith.addf %278, %280 : vector<8x128xf32>
    %282 = arith.negf %281 : vector<8x128xf32>
    %283 = math.exp %282 : vector<8x128xf32>
    %cst_41 = arith.constant 1.000000e+00 : f32
    %284 = vector.broadcast %cst_41 : f32 to vector<8x128xf32>
    %285 = arith.addf %284, %283 : vector<8x128xf32>
    %286 = arith.divf %284, %285 : vector<8x128xf32>
    %287 = vector.extract_strided_slice %286 {offsets = [0, 0], sizes = [8, 32], strides = [1, 1]} : vector<8x128xf32> to vector<8x32xf32>
    %288 = vector.extract_strided_slice %286 {offsets = [0, 32], sizes = [8, 32], strides = [1, 1]} : vector<8x128xf32> to vector<8x32xf32>
    %289 = vector.extract_strided_slice %286 {offsets = [0, 96], sizes = [8, 32], strides = [1, 1]} : vector<8x128xf32> to vector<8x32xf32>
    %290 = vector.extract_strided_slice %281 {offsets = [0, 64], sizes = [8, 32], strides = [1, 1]} : vector<8x128xf32> to vector<8x32xf32>
    %291 = math.tanh %290 : vector<8x32xf32>
    %292 = arith.mulf %288, %253 : vector<8x32xf32>
    %293 = arith.mulf %287, %291 : vector<8x32xf32>
    %294 = arith.addf %292, %293 : vector<8x32xf32>
    %295 = math.tanh %294 : vector<8x32xf32>
    %296 = arith.mulf %289, %295 : vector<8x32xf32>
    %297 = vector.extract_strided_slice %5 {offsets = [56, 0], sizes = [8, 128], strides = [1, 1]} : vector<64x128xf32> to vector<8x128xf32>
    %298 = vector.extract_strided_slice %275 {offsets = [0, 0], sizes = [8, 128], strides = [1, 1]} : vector<8x256xf32> to vector<8x128xf32>
    %299 = arith.addf %297, %298 : vector<8x128xf32>
    %300 = arith.negf %299 : vector<8x128xf32>
    %301 = math.exp %300 : vector<8x128xf32>
    %cst_42 = arith.constant 1.000000e+00 : f32
    %302 = vector.broadcast %cst_42 : f32 to vector<8x128xf32>
    %303 = arith.addf %302, %301 : vector<8x128xf32>
    %304 = arith.divf %302, %303 : vector<8x128xf32>
    %305 = vector.extract_strided_slice %304 {offsets = [0, 0], sizes = [8, 32], strides = [1, 1]} : vector<8x128xf32> to vector<8x32xf32>
    %306 = vector.extract_strided_slice %304 {offsets = [0, 32], sizes = [8, 32], strides = [1, 1]} : vector<8x128xf32> to vector<8x32xf32>
    %307 = vector.extract_strided_slice %304 {offsets = [0, 96], sizes = [8, 32], strides = [1, 1]} : vector<8x128xf32> to vector<8x32xf32>
    %308 = vector.extract_strided_slice %299 {offsets = [0, 64], sizes = [8, 32], strides = [1, 1]} : vector<8x128xf32> to vector<8x32xf32>
    %309 = math.tanh %308 : vector<8x32xf32>
    %310 = arith.mulf %306, %271 : vector<8x32xf32>
    %311 = arith.mulf %305, %309 : vector<8x32xf32>
    %312 = arith.addf %310, %311 : vector<8x32xf32>
    %313 = math.tanh %312 : vector<8x32xf32>
    %314 = arith.mulf %307, %313 : vector<8x32xf32>
    %315 = arith.truncf %314 : vector<8x32xf32> to vector<8x32xbf16>
    %cst_43 = arith.constant dense<0.000000e+00> : vector<8x256xf32>
    %316 = tpu.matmul %315, %6, %cst_43 {dimension_numbers = #tpu.dot_dimension_numbers<[1], [0], [0], [1], [0, 0, 1, 1], [], []>} : vector<8x32xbf16>, vector<32x256xbf16>, vector<8x256xf32> -> vector<8x256xf32>
    %317 = vector.extract_strided_slice %316 {offsets = [0, 128], sizes = [8, 128], strides = [1, 1]} : vector<8x256xf32> to vector<8x128xf32>
    %318 = vector.broadcast %8 : vector<1x128xf32> to vector<8x128xf32>
    %319 = arith.addf %317, %318 : vector<8x128xf32>
    %320 = arith.truncf %296 : vector<8x32xf32> to vector<8x32xbf16>
    %cst_44 = arith.constant dense<0.000000e+00> : vector<8x128xf32>
    %321 = tpu.matmul %320, %7, %cst_44 {dimension_numbers = #tpu.dot_dimension_numbers<[1], [0], [0], [1], [0, 0, 1, 1], [], []>} : vector<8x32xbf16>, vector<32x128xbf16>, vector<8x128xf32> -> vector<8x128xf32>
    %322 = arith.addf %319, %321 : vector<8x128xf32>
    %323 = arith.negf %322 : vector<8x128xf32>
    %324 = math.exp %323 : vector<8x128xf32>
    %cst_45 = arith.constant 1.000000e+00 : f32
    %325 = vector.broadcast %cst_45 : f32 to vector<8x128xf32>
    %326 = arith.addf %325, %324 : vector<8x128xf32>
    %327 = arith.divf %325, %326 : vector<8x128xf32>
    %328 = vector.extract_strided_slice %327 {offsets = [0, 0], sizes = [8, 32], strides = [1, 1]} : vector<8x128xf32> to vector<8x32xf32>
    %329 = vector.extract_strided_slice %327 {offsets = [0, 32], sizes = [8, 32], strides = [1, 1]} : vector<8x128xf32> to vector<8x32xf32>
    %330 = vector.extract_strided_slice %327 {offsets = [0, 96], sizes = [8, 32], strides = [1, 1]} : vector<8x128xf32> to vector<8x32xf32>
    %331 = vector.extract_strided_slice %322 {offsets = [0, 64], sizes = [8, 32], strides = [1, 1]} : vector<8x128xf32> to vector<8x32xf32>
    %332 = math.tanh %331 : vector<8x32xf32>
    %333 = arith.mulf %329, %294 : vector<8x32xf32>
    %334 = arith.mulf %328, %332 : vector<8x32xf32>
    %335 = arith.addf %333, %334 : vector<8x32xf32>
    %336 = math.tanh %335 : vector<8x32xf32>
    %337 = arith.mulf %330, %336 : vector<8x32xf32>
    %c0_46 = arith.constant 0 : index
    %c0_47 = arith.constant 0 : index
    %338 = vector.load %arg6[%c0_46, %c0_47] : memref<32x24xf32, #tpu.memory_space<vmem>>, vector<32x24xf32>
    %cst_48 = arith.constant dense<0.000000e+00> : vector<8x24xf32>
    %339 = tpu.matmul %337, %338, %cst_48 {dimension_numbers = #tpu.dot_dimension_numbers<[1], [0], [0], [1], [0, 0, 1, 1], [], []>} : vector<8x32xf32>, vector<32x24xf32>, vector<8x24xf32> -> vector<8x24xf32>
    %c0_49 = arith.constant 0 : index
    %c0_50 = arith.constant 0 : index
    %340 = vector.load %arg7[%c0_49, %c0_50] : memref<1x24xf32, #tpu.memory_space<vmem>>, vector<1x24xf32>
    %341 = vector.broadcast %340 : vector<1x24xf32> to vector<8x24xf32>
    %342 = arith.addf %339, %341 : vector<8x24xf32>
    %343 = vector.extract_strided_slice %342 {offsets = [0, 0], sizes = [2, 24], strides = [1, 1]} : vector<8x24xf32> to vector<2x24xf32>
    %c0_51 = arith.constant 0 : index
    %c0_52 = arith.constant 0 : index
    %344 = vector.load %arg8[%c0_51, %c0_52] : memref<2x24xf32, #tpu.memory_space<vmem>>, vector<2x24xf32>
    tpu.vector_store %arg8[%c0_51, %c0_52], %343 {strides = array<i32>} : memref<2x24xf32, #tpu.memory_space<vmem>>, vector<2x24xf32>,
    return
  }
}

</mosaic_0001>

<bundles_post_ra>
// kernel: pvlstm_forward.1
= control target key start
LH: loop header
LB: loop body
LE: loop exit
PB: predicated region body
PF: predicated region fallthrough
CT: control target
= control target key end

     0   :  { %vm72_vm0 = vcmask 1042432   ;;  %vm47_vm1 = vcmask 23552   ;;  %s2251_s0 = inlined_call_operand.vmem [shape: f32[64,3], index: 0, kind: input, shape index: {}]   ;;  %s2252_s1 = inlined_call_operand.vmem [shape: f32[3,128], index: 1, kind: input, shape index: {}]   ;;  %s2253_s2 = inlined_call_operand.vmem [shape: f32[1,128], index: 2, kind: input, shape index: {}]   ;;  %s2254_s3 = inlined_call_operand.vmem [shape: bf16[32,256], index: 3, kind: input, shape index: {}]   ;;  %s2255_s4 = inlined_call_operand.vmem [shape: bf16[32,128], index: 4, kind: input, shape index: {}]   ;;  %s2256_s5 = inlined_call_operand.vmem [shape: f32[1,128], index: 5, kind: input, shape index: {}]   ;;  %s2257_s6 = inlined_call_operand.vmem [shape: f32[32,24], index: 6, kind: input, shape index: {}]   ;;  %s2258_s7 = inlined_call_operand.vmem [shape: f32[1,24], index: 7, kind: input, shape index: {}]   ;;  %s2259_s8 = inlined_call_operand.hbm [shape: f32[2,24], index: 8, kind: output, shape index: {}]  }
   0x1   :  { %v39_v0 = vld [vmem:[%s2252_s1] sm:$0x7]  ;;  %v32_v2 = vld [vmem:[%s2251_s0 + $0x8] sm:$0xff] }
   0x2   :  { %v31_v1 = vld [vmem:[%s2251_s0] sm:$0xff]  ;;  %1581 = vmatprep.subr.msk.mxu0 %vm72_vm0, %v39_v0 }
   0x3   :  { %1583 = vmatprep.mubr.msk.f32.mxu0 %vm47_vm1, %v31_v1  ;;  %1582 = vmatpush3.msk.msra.mxu0 %vm72_vm0, %v39_v0 }
   0x4   :  { %1584 = vmatmul.mubr.msk.f32.vlgmr.msra.gmra.mrb[0].mxu0 %vm47_vm1, %v32_v2 }
   0x5   :  { %13 = vsyncpa [#allocation3], 0  ;;  %v1909_v3 = vld [vmem:[%s2253_s2] ss:$0 sm:$0xff]  ;;  %s1843_s1 = smov 64   ;;  %s1844_s13 = smov 32  }
   0x6   :  { %v1920_v17 = vld [vmem:[%s2254_s3 + $0x4] ss:$8 sps:$4 sm:$0xff]   ;;  %v1925_v18 = vld [vmem:[%s2254_s3] ss:$8 sps:$4 sm:$0xff]   ;;  %v1930_v19 = vld [vmem:[%s2254_s3 + $0x14] ss:$8 sps:$4 sm:$0xff]  }
   0x7   :  { %242 = vmatprep.subr.bf16.mxu1 %v1920_v17  ;;  %v1845_v20 = vmov 0   ;;  %v1938_v21 = vld [vmem:[%s2254_s3 + $0x10] ss:$8 sps:$4 sm:$0xff]   ;;  %402 = vmatprep.subr.bf16.mxu0 %v1920_v17  ;;  %v1846_v23 = vmov 0.0   ;;  %vm238_vm2 = vcmask 261120   ;;  %v1953_v27 = vld [vmem:[%s2255_s4] sm:$0xff]  }
   0x8   :  { %274 = vmatprep.mubr.bf16.mxu1 %v1845_v20  ;;  %243 = vmatpush1.bf16.msra.mxu1 %v1925_v18  ;;  %v1960_v29 = vld [vmem:[%s2255_s4 + $0x8] sm:$0xff]   ;;  %vm1847_vm3 = vmmov 0   ;;  %v1978_v36 = vld [vmem:[%s2256_s5] ss:$0 sm:$0xff]  ;;  %v33_v0 = vld [vmem:[%s2251_s0 + $0x10] sm:$0xff]  ;;  %s1849_s22 = smov [#allocation2]  }
   0x9   :  { %244 = vmatprep.subr.bf16.mxu1 %v1930_v19  ;;  %403 = vmatpush1.bf16.msra.mxu0 %v1925_v18  ;;  %v34_v1 = vld [vmem:[%s2251_s0 + $0x18] sm:$0xff]  ;;  %v35_v2 = vld [vmem:[%s2251_s0 + $0x20] sm:$0xff]  ;;  %vm1477_vm4 = vcmask 189440  }
   0xa   :  { %404 = vmatprep.subr.bf16.mxu0 %v1930_v19  ;;  %1586 = vmatprep.mubr.msk.f32.mxu0 %vm47_vm1, %v33_v0 }
   0xb   :  { %1587 = vmatmul.mubr.msk.f32.gmra.mrb[2].mxu0 %vm47_vm1, %v34_v1 }
   0xc   :  { %245 = vmatpush1.bf16.msra.mxu1 %v1938_v21  ;;  %1589 = vmatprep.mubr.msk.f32.mxu0 %vm47_vm1, %v35_v2 }
   0xd   :  { %1595 = vmatprep.subr.bf16.mxu1 %v1846_v23  ;;  %405 = vmatpush1.bf16.msra.mxu0 %v1938_v21 }
   0xe   :  { %548 = vmatprep.subr.bf16.mxu0 %v1920_v17 }
  0xd7   :  { %v1585_v4 = vpop.f32.mrb[0].mxu0 }
  0xd8   :  { %v142_v5 = vpop.f32.mrb[1].mxu0  ;;  %v148_v30 = vadd.f32 %v1585_v4, %v1909_v3  ;;  %v36_v4 = vld [vmem:[%s2251_s0 + $0x28] sm:$0xff] }
  0xd9   :  { %v143_v6 = vadd.f32 %v1909_v3, %v142_v5  ;;  %v37_v5 = vld [vmem:[%s2251_s0 + $0x30] sm:$0xff]  ;;  %1590 = vmatmul.mubr.msk.f32.gmra.mrb[4].mxu0 %vm47_vm1, %v36_v4 }
  0xda   :  { %1592 = vmatprep.mubr.msk.f32.mxu0 %vm47_vm1, %v37_v5 }
  0xdb   :  { %1691 = vtanh.f32 %v143_v6  ;;  %v1503_v8 = vmul.f32 -1.442695, %v143_v6  ;;  %v38_v6 = vld [vmem:[%s2251_s0 + $0x38] sm:$0xff] }
  0xdd   :  { %1693 = vpow2.f32 %v1503_v8  ;;  %1593 = vmatmul.mubr.msk.f32.gmra.mrb[6].mxu0 %vm47_vm1, %v38_v6 }
  0xde   :  { %434 = vmatprep.mubr.bf16.mxu0 %v1845_v20 }
  0xe5   :  { %v1692_v7 = vpop.eup %1691 }
  0xe6   :  { %199 = vrot.lane.b32.xlu0 %v1692_v7, %s1843_s1 }
  0xe7   :  { %v1694_v9 = vpop.eup %1693 }
  0xe8   :  { %v193_v10 = vadd.f32 1.0, %v1694_v9 }
  0xea   :  { %1695 = vrcp.f32 %v193_v10 }
  0xf4   :  { %v1696_v11 = vpop.eup %1695 }
  0xf5   :  { %v197_v14 = vmul.f32 0.0, %v1696_v11 }
 0x158   :  { %v200_v12 = vpop.permute.xlu0 %199 }
 0x159   :  { %v202_v13 = vmul.f32 %v1696_v11, %v200_v12 }
 0x15b   :  { %204 = vrot.lane.b32.xlu0 %v202_v13, %s1844_s13 }
 0x1cd   :  { %v205_v15 = vpop.permute.xlu0 %204 }
 0x1ce   :  { %v1914_v16 = vadd.f32 %v205_v15, %v197_v14  ;;  %v2021_v14 = vpop.f32.mrb[2].mxu0 }
 0x1cf   :  { %v152_v15 = vpop.f32.mrb[3].mxu0 }
 0x1d0   :  { %1697 = vtanh.f32 %v1914_v16 }
 0x1da   :  { %v1698_v22 = vpop.eup %1697 }
 0x1db   :  { %210 = vrot.lane.b32.xlu1 %v1698_v22, %s1843_s1 }
 0x24d   :  { %v211_v24 = vpop.permute.xlu1 %210 }
 0x24e   :  { %v213_v25 = vmul.f32 %v1696_v11, %v211_v24 }
 0x250   :  { %v214_v26 = vpack.c.bf16 %v213_v25, %v213_v25 }
 0x252   :  { %216 = vrot.lane.b32.xlu1 %v214_v26, %s1844_s13 }
 0x2c4   :  { %v217_v28 = vpop.permute.xlu1 %216 }
 0x2c5   :  { %1508 = vmatmul.mubr.msk.bf16.vlgmr.msra.gmra.mrb[0].mxu1 %vm238_vm2, %v217_v28 }
 0x2c6   :  { %1596 = vmatpush3.bf16.msra.mxu1 %v1953_v27  ;;  %1599 = vmatprep.mubr.msk.bf16.mxu1 %vm1847_vm3, %v1846_v23 }
 0x2c7   :  { %1597 = vmatprep.subr.bf16.mxu1 %v1846_v23 }
 0x2ca   :  { %1598 = vmatpush3.bf16.msra.mxu1 %v1960_v29 }
 0x2cb   :  { %1603 = vmatprep.subr.bf16.mxu1 %v1846_v23 }
 0x2cd   :  { %1600 = vmatmul.mubr.bf16.vlgmr.msra.gmra.mrb[4].mxu1 %v1845_v20 }
 0x2ce   :  { %1604 = vmatpush3.bf16.msra.mxu1 %v1953_v27  ;;  %1607 = vmatprep.mubr.msk.bf16.mxu1 %vm1847_vm3, %v1846_v23 }
 0x2cf   :  { %1605 = vmatprep.subr.bf16.mxu1 %v1846_v23 }
 0x2d2   :  { %1606 = vmatpush3.bf16.msra.mxu1 %v1960_v29 }
 0x2d3   :  { %1611 = vmatprep.subr.bf16.mxu1 %v1846_v23 }
 0x398   :  { %v276_v31 = vpop.f32.mrb[0].mxu1 }
 0x399   :  { %v370_v32 = vadd.f32 %v276_v31, %v148_v30  ;;  %v278_v33 = vpop.f32.mrb[1].mxu1  ;;  %v153_v30 = vadd.f32 %v1909_v3, %v152_v15 }
 0x39a   :  { %v280_v34 = vpop.f32.mrb[2].mxu1  ;;  %v289_v37 = vadd.f32 %v1978_v36, %v278_v33 }
 0x39b   :  { %1699 = vtanh.f32 %v370_v32  ;;  %v281_v35 = vpop.f32.mrb[3].mxu1  ;;  %v1513_v45 = vmul.f32 -1.442695, %v370_v32 }
 0x3a0   :  { %v339_v38 = vpop.f32.mrb[4].mxu1 }
 0x3a1   :  { %v345_v39 = vadd.f32 %v339_v38, %v289_v37  ;;  %v1601_v40 = vpop.f32.mrb[5].mxu1 }
 0x3a2   :  { %v342_v41 = vpop.f32.mrb[6].mxu1 }
 0x3a3   :  { %1701 = vtanh.f32 %v345_v39  ;;  %v1602_v42 = vpop.f32.mrb[7].mxu1  ;;  %v1512_v46 = vmul.f32 -1.442695, %v345_v39 }
 0x3a4   :  { %1703 = vpow2.f32 %v1513_v45 }
 0x3a5   :  { %v1700_v43 = vpop.eup %1699  ;;  %1705 = vpow2.f32 %v1512_v46 }
 0x3a6   :  { %380 = vrot.lane.b32.xlu0 %v1700_v43, %s1843_s1 }
 0x3ad   :  { %v1702_v44 = vpop.eup %1701 }
 0x3ae   :  { %355 = vrot.lane.b32.xlu1 %v1702_v44, %s1843_s1  ;;  %v1704_v47 = vpop.eup %1703 }
 0x3af   :  { %v374_v48 = vadd.f32 1.0, %v1704_v47  ;;  %v1706_v49 = vpop.eup %1705 }
 0x3b0   :  { %v349_v50 = vadd.f32 1.0, %v1706_v49 }
 0x3b1   :  { %1707 = vrcp.f32 %v374_v48 }
 0x3b2   :  { %1709 = vrcp.f32 %v349_v50 }
 0x3bb   :  { %v1708_v51 = vpop.eup %1707 }
 0x3bc   :  { %v1710_v54 = vpop.eup %1709  ;;  %v378_v57 = vmul.f32 %v1708_v51, %v1914_v16  ;;  %v2023_v16 = vpop.f32.mrb[4].mxu0 }
 0x3bd   :  { %v353_v60 = vmul.f32 0.0, %v1710_v54  ;;  %v2025_v22 = vpop.f32.mrb[5].mxu0 }
 0x3be   :  { %v2027_v24 = vpop.f32.mrb[6].mxu0 }
 0x3bf   :  { %v2029_v25 = vpop.f32.mrb[7].mxu0 }
 0x418   :  { %v381_v52 = vpop.permute.xlu0 %380 }
 0x419   :  { %v383_v53 = vmul.f32 %v1708_v51, %v381_v52 }
 0x41b   :  { %385 = vrot.lane.b32.xlu0 %v383_v53, %s1844_s13 }
 0x420   :  { %v356_v55 = vpop.permute.xlu1 %355 }
 0x421   :  { %v358_v56 = vmul.f32 %v1710_v54, %v356_v55 }
 0x423   :  { %360 = vrot.lane.b32.xlu1 %v358_v56, %s1844_s13 }
 0x48d   :  { %v386_v58 = vpop.permute.xlu0 %385 }
 0x48e   :  { %v1986_v59 = vadd.f32 %v386_v58, %v378_v57 }
 0x490   :  { %1711 = vtanh.f32 %v1986_v59 }
 0x495   :  { %v361_v61 = vpop.permute.xlu1 %360 }
 0x496   :  { %v1989_v62 = vadd.f32 %v361_v61, %v353_v60 }
 0x498   :  { %1713 = vtanh.f32 %v1989_v62 }
 0x49a   :  { %v1712_v63 = vpop.eup %1711 }
 0x49b   :  { %391 = vrot.lane.b32.xlu0 %v1712_v63, %s1843_s1 }
 0x4a2   :  { %v1714_v7 = vpop.eup %1713 }
 0x4a3   :  { %366 = vrot.lane.b32.xlu1 %v1714_v7, %s1843_s1 }
 0x50d   :  { %v392_v8 = vpop.permute.xlu0 %391 }
 0x50e   :  { %v394_v9 = vmul.f32 %v1708_v51, %v392_v8 }
 0x510   :  { %v395_v10 = vpack.c.bf16 %v394_v9, %v394_v9 }
 0x512   :  { %397 = vrot.lane.b32.xlu0 %v395_v10, %s1844_s13  ;;  %v158_v10 = vadd.f32 %v2021_v14, %v1909_v3 }
 0x515   :  { %v367_v11 = vpop.permute.xlu1 %366 }
 0x516   :  { %v369_v12 = vmul.f32 %v1710_v54, %v367_v11 }
 0x518   :  { %v444_v13 = vpack.c.bf16 %v369_v12, %v369_v12 }
 0x51a   :  { %446 = vrot.lane.b32.xlu1 %v444_v13, %s1844_s13 }
 0x584   :  { %v398_v26 = vpop.permute.xlu0 %397 }
 0x585   :  { %1514 = vmatmul.mubr.msk.bf16.vlgmr.msra.gmra.mrb[8].mxu0 %vm238_vm2, %v398_v26 }
 0x586   :  { %549 = vmatpush1.bf16.msra.mxu0 %v1925_v18  ;;  %580 = vmatprep.mubr.bf16.mxu0 %v1845_v20 }
 0x587   :  { %550 = vmatprep.subr.bf16.mxu0 %v1930_v19 }
 0x58a   :  { %551 = vmatpush1.bf16.msra.mxu0 %v1938_v21 }
 0x58b   :  { %694 = vmatprep.subr.bf16.mxu0 %v1920_v17 }
 0x58c   :  { %v447_v28 = vpop.permute.xlu1 %446 }
 0x58d   :  { %1608 = vmatmul.mubr.msk.bf16.vlgmr.msra.gmra.mrb[8].mxu1 %vm238_vm2, %v447_v28 }
 0x58e   :  { %1612 = vmatpush3.bf16.msra.mxu1 %v1953_v27  ;;  %1615 = vmatprep.mubr.msk.bf16.mxu1 %vm1847_vm3, %v1846_v23 }
 0x58f   :  { %1613 = vmatprep.subr.bf16.mxu1 %v1846_v23 }
 0x592   :  { %1614 = vmatpush3.bf16.msra.mxu1 %v1960_v29 }
 0x593   :  { %1619 = vmatprep.subr.bf16.mxu1 %v1846_v23 }
 0x658   :  { %v436_v31 = vpop.f32.mrb[8].mxu0 }
 0x659   :  { %v516_v32 = vadd.f32 %v436_v31, %v153_v30  ;;  %v438_v33 = vpop.f32.mrb[9].mxu0 }
 0x65a   :  { %v440_v34 = vpop.f32.mrb[10].mxu0  ;;  %v443_v37 = vadd.f32 %v1978_v36, %v438_v33 }
 0x65b   :  { %1715 = vtanh.f32 %v516_v32  ;;  %v441_v35 = vpop.f32.mrb[11].mxu0  ;;  %v1517_v45 = vmul.f32 -1.442695, %v516_v32 }
 0x660   :  { %v485_v38 = vpop.f32.mrb[8].mxu1 }
 0x661   :  { %v491_v39 = vadd.f32 %v485_v38, %v443_v37  ;;  %v1609_v40 = vpop.f32.mrb[9].mxu1 }
 0x662   :  { %v488_v41 = vpop.f32.mrb[10].mxu1 }
 0x663   :  { %1717 = vtanh.f32 %v491_v39  ;;  %v1610_v42 = vpop.f32.mrb[11].mxu1  ;;  %v1516_v46 = vmul.f32 -1.442695, %v491_v39 }
 0x664   :  { %1719 = vpow2.f32 %v1517_v45 }
 0x665   :  { %v1716_v43 = vpop.eup %1715  ;;  %1721 = vpow2.f32 %v1516_v46 }
 0x666   :  { %526 = vrot.lane.b32.xlu0 %v1716_v43, %s1843_s1 }
 0x66d   :  { %v1718_v44 = vpop.eup %1717 }
 0x66e   :  { %501 = vrot.lane.b32.xlu1 %v1718_v44, %s1843_s1  ;;  %v1720_v47 = vpop.eup %1719 }
 0x66f   :  { %v520_v48 = vadd.f32 1.0, %v1720_v47  ;;  %v1722_v49 = vpop.eup %1721 }
 0x670   :  { %v495_v50 = vadd.f32 1.0, %v1722_v49 }
 0x671   :  { %1723 = vrcp.f32 %v520_v48 }
 0x672   :  { %1725 = vrcp.f32 %v495_v50 }
 0x67b   :  { %v1724_v51 = vpop.eup %1723 }
 0x67c   :  { %v1726_v54 = vpop.eup %1725  ;;  %v524_v57 = vmul.f32 %v1724_v51, %v1986_v59 }
 0x67d   :  { %v499_v61 = vmul.f32 %v1726_v54, %v1989_v62 }
 0x6d8   :  { %v527_v52 = vpop.permute.xlu0 %526 }
 0x6d9   :  { %v529_v53 = vmul.f32 %v1724_v51, %v527_v52 }
 0x6db   :  { %531 = vrot.lane.b32.xlu0 %v529_v53, %s1844_s13 }
 0x6e0   :  { %v502_v55 = vpop.permute.xlu1 %501 }
 0x6e1   :  { %v504_v56 = vmul.f32 %v1726_v54, %v502_v55 }
 0x6e3   :  { %506 = vrot.lane.b32.xlu1 %v504_v56, %s1844_s13 }
 0x74d   :  { %v532_v58 = vpop.permute.xlu0 %531 }
 0x74e   :  { %v2051_v60 = vadd.f32 %v532_v58, %v524_v57 }
 0x750   :  { %1727 = vtanh.f32 %v2051_v60 }
 0x755   :  { %v507_v63 = vpop.permute.xlu1 %506 }
 0x756   :  { %v2055_v0 = vadd.f32 %v507_v63, %v499_v61 }
 0x758   :  { %1729 = vtanh.f32 %v2055_v0 }
 0x75a   :  { %v1728_v1 = vpop.eup %1727 }
 0x75b   :  { %537 = vrot.lane.b32.xlu0 %v1728_v1, %s1843_s1 }
 0x762   :  { %v1730_v2 = vpop.eup %1729 }
 0x763   :  { %512 = vrot.lane.b32.xlu1 %v1730_v2, %s1843_s1 }
 0x7cd   :  { %v538_v4 = vpop.permute.xlu0 %537 }
 0x7ce   :  { %v540_v59 = vmul.f32 %v1724_v51, %v538_v4  ;;  %v163_v4 = vadd.f32 %v1909_v3, %v2025_v22 }
 0x7d0   :  { %v541_v5 = vpack.c.bf16 %v540_v59, %v540_v59 }
 0x7d2   :  { %543 = vrot.lane.b32.xlu0 %v541_v5, %s1844_s13 }
 0x7d5   :  { %v513_v6 = vpop.permute.xlu1 %512 }
 0x7d6   :  { %v515_v7 = vmul.f32 %v1726_v54, %v513_v6 }
 0x7d8   :  { %v590_v8 = vpack.c.bf16 %v515_v7, %v515_v7 }
 0x7da   :  { %592 = vrot.lane.b32.xlu1 %v590_v8, %s1844_s13 }
 0x844   :  { %v544_v62 = vpop.permute.xlu0 %543 }
 0x845   :  { %1518 = vmatmul.mubr.msk.bf16.vlgmr.msra.gmra.mrb[12].mxu0 %vm238_vm2, %v544_v62 }
 0x846   :  { %695 = vmatpush1.bf16.msra.mxu0 %v1925_v18  ;;  %726 = vmatprep.mubr.bf16.mxu0 %v1845_v20 }
 0x847   :  { %696 = vmatprep.subr.bf16.mxu0 %v1930_v19 }
 0x84a   :  { %697 = vmatpush1.bf16.msra.mxu0 %v1938_v21 }
 0x84b   :  { %840 = vmatprep.subr.bf16.mxu0 %v1920_v17 }
 0x84c   :  { %v593_v9 = vpop.permute.xlu1 %592 }
 0x84d   :  { %1616 = vmatmul.mubr.msk.bf16.vlgmr.msra.gmra.mrb[12].mxu1 %vm238_vm2, %v593_v9 }
 0x84e   :  { %1620 = vmatpush3.bf16.msra.mxu1 %v1953_v27  ;;  %1623 = vmatprep.mubr.msk.bf16.mxu1 %vm1847_vm3, %v1846_v23 }
 0x84f   :  { %1621 = vmatprep.subr.bf16.mxu1 %v1846_v23 }
 0x852   :  { %1622 = vmatpush3.bf16.msra.mxu1 %v1960_v29 }
 0x853   :  { %1627 = vmatprep.subr.bf16.mxu1 %v1846_v23 }
 0x918   :  { %v582_v11 = vpop.f32.mrb[12].mxu0 }
 0x919   :  { %v662_v12 = vadd.f32 %v582_v11, %v158_v10  ;;  %v584_v13 = vpop.f32.mrb[13].mxu0 }
 0x91a   :  { %v586_v15 = vpop.f32.mrb[14].mxu0  ;;  %v589_v28 = vadd.f32 %v1978_v36, %v584_v13 }
 0x91b   :  { %1731 = vtanh.f32 %v662_v12  ;;  %v587_v26 = vpop.f32.mrb[15].mxu0  ;;  %v1521_v14 = vmul.f32 -1.442695, %v662_v12 }
 0x920   :  { %v631_v30 = vpop.f32.mrb[12].mxu1 }
 0x921   :  { %v637_v31 = vadd.f32 %v631_v30, %v589_v28  ;;  %v1617_v32 = vpop.f32.mrb[13].mxu1 }
 0x922   :  { %v634_v33 = vpop.f32.mrb[14].mxu1 }
 0x923   :  { %1733 = vtanh.f32 %v637_v31  ;;  %v1618_v34 = vpop.f32.mrb[15].mxu1  ;;  %v1520_v38 = vmul.f32 -1.442695, %v637_v31 }
 0x924   :  { %1735 = vpow2.f32 %v1521_v14 }
 0x925   :  { %v1732_v35 = vpop.eup %1731  ;;  %1737 = vpow2.f32 %v1520_v38 }
 0x926   :  { %672 = vrot.lane.b32.xlu0 %v1732_v35, %s1843_s1 }
 0x92d   :  { %v1734_v37 = vpop.eup %1733 }
 0x92e   :  { %647 = vrot.lane.b32.xlu1 %v1734_v37, %s1843_s1  ;;  %v1736_v39 = vpop.eup %1735 }
 0x92f   :  { %v666_v40 = vadd.f32 1.0, %v1736_v39  ;;  %v1738_v41 = vpop.eup %1737 }
 0x930   :  { %v641_v42 = vadd.f32 1.0, %v1738_v41 }
 0x931   :  { %1739 = vrcp.f32 %v666_v40 }
 0x932   :  { %1741 = vrcp.f32 %v641_v42 }
 0x93b   :  { %v1740_v43 = vpop.eup %1739 }
 0x93c   :  { %v1742_v46 = vpop.eup %1741  ;;  %v670_v49 = vmul.f32 %v1740_v43, %v2051_v60 }
 0x93d   :  { %v645_v52 = vmul.f32 %v1742_v46, %v2055_v0 }
 0x998   :  { %v673_v44 = vpop.permute.xlu0 %672 }
 0x999   :  { %v675_v45 = vmul.f32 %v1740_v43, %v673_v44 }
 0x99b   :  { %677 = vrot.lane.b32.xlu0 %v675_v45, %s1844_s13 }
 0x9a0   :  { %v648_v47 = vpop.permute.xlu1 %647 }
 0x9a1   :  { %v650_v48 = vmul.f32 %v1742_v46, %v648_v47 }
 0x9a3   :  { %652 = vrot.lane.b32.xlu1 %v650_v48, %s1844_s13 }
 0xa0d   :  { %v678_v50 = vpop.permute.xlu0 %677 }
 0xa0e   :  { %v2083_v51 = vadd.f32 %v678_v50, %v670_v49 }
 0xa10   :  { %1743 = vtanh.f32 %v2083_v51 }
 0xa15   :  { %v653_v53 = vpop.permute.xlu1 %652 }
 0xa16   :  { %v2087_v54 = vadd.f32 %v653_v53, %v645_v52 }
 0xa18   :  { %1745 = vtanh.f32 %v2087_v54 }
 0xa1a   :  { %v1744_v55 = vpop.eup %1743 }
 0xa1b   :  { %683 = vrot.lane.b32.xlu0 %v1744_v55, %s1843_s1 }
 0xa22   :  { %v1746_v56 = vpop.eup %1745 }
 0xa23   :  { %658 = vrot.lane.b32.xlu1 %v1746_v56, %s1843_s1  ;;  %v168_v56 = vadd.f32 %v2023_v16, %v1909_v3 }
 0xa8d   :  { %v684_v57 = vpop.permute.xlu0 %683 }
 0xa8e   :  { %v686_v58 = vmul.f32 %v1740_v43, %v684_v57 }
 0xa90   :  { %v687_v60 = vpack.c.bf16 %v686_v58, %v686_v58 }
 0xa92   :  { %689 = vrot.lane.b32.xlu0 %v687_v60, %s1844_s13 }
 0xa95   :  { %v659_v61 = vpop.permute.xlu1 %658 }
 0xa96   :  { %v661_v63 = vmul.f32 %v1742_v46, %v659_v61 }
 0xa98   :  { %v736_v1 = vpack.c.bf16 %v661_v63, %v661_v63 }
 0xa9a   :  { %738 = vrot.lane.b32.xlu1 %v736_v1, %s1844_s13 }
 0xb04   :  { %v690_v0 = vpop.permute.xlu0 %689 }
 0xb05   :  { %1522 = vmatmul.mubr.msk.bf16.vlgmr.msra.gmra.mrb[16].mxu0 %vm238_vm2, %v690_v0 }
 0xb06   :  { %841 = vmatpush1.bf16.msra.mxu0 %v1925_v18  ;;  %872 = vmatprep.mubr.bf16.mxu0 %v1845_v20 }
 0xb07   :  { %842 = vmatprep.subr.bf16.mxu0 %v1930_v19 }
 0xb0a   :  { %843 = vmatpush1.bf16.msra.mxu0 %v1938_v21 }
 0xb0b   :  { %986 = vmatprep.subr.bf16.mxu0 %v1920_v17 }
 0xb0c   :  { %v739_v2 = vpop.permute.xlu1 %738 }
 0xb0d   :  { %1624 = vmatmul.mubr.msk.bf16.vlgmr.msra.gmra.mrb[16].mxu1 %vm238_vm2, %v739_v2 }
 0xb0e   :  { %1628 = vmatpush3.bf16.msra.mxu1 %v1953_v27  ;;  %1631 = vmatprep.mubr.msk.bf16.mxu1 %vm1847_vm3, %v1846_v23 }
 0xb0f   :  { %1629 = vmatprep.subr.bf16.mxu1 %v1846_v23 }
 0xb12   :  { %1630 = vmatpush3.bf16.msra.mxu1 %v1960_v29 }
 0xb13   :  { %1635 = vmatprep.subr.bf16.mxu1 %v1846_v23 }
 0xbd8   :  { %v728_v59 = vpop.f32.mrb[16].mxu0 }
 0xbd9   :  { %v808_v5 = vadd.f32 %v728_v59, %v163_v4  ;;  %v730_v6 = vpop.f32.mrb[17].mxu0 }
 0xbda   :  { %v732_v7 = vpop.f32.mrb[18].mxu0  ;;  %v735_v62 = vadd.f32 %v1978_v36, %v730_v6 }
 0xbdb   :  { %1747 = vtanh.f32 %v808_v5  ;;  %v733_v8 = vpop.f32.mrb[19].mxu0  ;;  %v1525_v22 = vmul.f32 -1.442695, %v808_v5 }
 0xbe0   :  { %v777_v9 = vpop.f32.mrb[16].mxu1 }
 0xbe1   :  { %v783_v10 = vadd.f32 %v777_v9, %v735_v62  ;;  %v1625_v11 = vpop.f32.mrb[17].mxu1 }
 0xbe2   :  { %v780_v12 = vpop.f32.mrb[18].mxu1 }
 0xbe3   :  { %1749 = vtanh.f32 %v783_v10  ;;  %v1626_v13 = vpop.f32.mrb[19].mxu1  ;;  %v1524_v28 = vmul.f32 -1.442695, %v783_v10 }
 0xbe4   :  { %1751 = vpow2.f32 %v1525_v22 }
 0xbe5   :  { %v1748_v15 = vpop.eup %1747  ;;  %1753 = vpow2.f32 %v1524_v28 }
 0xbe6   :  { %818 = vrot.lane.b32.xlu0 %v1748_v15, %s1843_s1 }
 0xbed   :  { %v1750_v26 = vpop.eup %1749 }
 0xbee   :  { %793 = vrot.lane.b32.xlu1 %v1750_v26, %s1843_s1  ;;  %v1752_v30 = vpop.eup %1751 }
 0xbef   :  { %v812_v31 = vadd.f32 1.0, %v1752_v30  ;;  %v1754_v32 = vpop.eup %1753 }
 0xbf0   :  { %v787_v33 = vadd.f32 1.0, %v1754_v32 }
 0xbf1   :  { %1755 = vrcp.f32 %v812_v31 }
 0xbf2   :  { %1757 = vrcp.f32 %v787_v33 }
 0xbfb   :  { %v1756_v34 = vpop.eup %1755 }
 0xbfc   :  { %v1758_v14 = vpop.eup %1757  ;;  %v816_v40 = vmul.f32 %v1756_v34, %v2083_v51 }
 0xbfd   :  { %v791_v43 = vmul.f32 %v1758_v14, %v2087_v54 }
 0xc58   :  { %v819_v35 = vpop.permute.xlu0 %818 }
 0xc59   :  { %v821_v37 = vmul.f32 %v1756_v34, %v819_v35 }
 0xc5b   :  { %823 = vrot.lane.b32.xlu0 %v821_v37, %s1844_s13 }
 0xc60   :  { %v794_v38 = vpop.permute.xlu1 %793 }
 0xc61   :  { %v796_v39 = vmul.f32 %v1758_v14, %v794_v38 }
 0xc63   :  { %798 = vrot.lane.b32.xlu1 %v796_v39, %s1844_s13 }
 0xccd   :  { %v824_v41 = vpop.permute.xlu0 %823 }
 0xcce   :  { %v2115_v42 = vadd.f32 %v824_v41, %v816_v40 }
 0xcd0   :  { %1759 = vtanh.f32 %v2115_v42 }
 0xcd5   :  { %v799_v44 = vpop.permute.xlu1 %798 }
 0xcd6   :  { %v2119_v45 = vadd.f32 %v799_v44, %v791_v43 }
 0xcd8   :  { %1761 = vtanh.f32 %v2119_v45 }
 0xcda   :  { %v1760_v46 = vpop.eup %1759 }
 0xcdb   :  { %829 = vrot.lane.b32.xlu0 %v1760_v46, %s1843_s1  ;;  %v173_v46 = vadd.f32 %v1909_v3, %v2029_v25 }
 0xce2   :  { %v1762_v47 = vpop.eup %1761 }
 0xce3   :  { %804 = vrot.lane.b32.xlu1 %v1762_v47, %s1843_s1 }
 0xd4d   :  { %v830_v48 = vpop.permute.xlu0 %829 }
 0xd4e   :  { %v832_v49 = vmul.f32 %v1756_v34, %v830_v48 }
 0xd50   :  { %v833_v50 = vpack.c.bf16 %v832_v49, %v832_v49 }
 0xd52   :  { %835 = vrot.lane.b32.xlu0 %v833_v50, %s1844_s13 }
 0xd55   :  { %v805_v51 = vpop.permute.xlu1 %804 }
 0xd56   :  { %v807_v52 = vmul.f32 %v1758_v14, %v805_v51 }
 0xd58   :  { %v882_v53 = vpack.c.bf16 %v807_v52, %v807_v52 }
 0xd5a   :  { %884 = vrot.lane.b32.xlu1 %v882_v53, %s1844_s13 }
 0xdc4   :  { %v836_v54 = vpop.permute.xlu0 %835 }
 0xdc5   :  { %1526 = vmatmul.mubr.msk.bf16.vlgmr.msra.gmra.mrb[20].mxu0 %vm238_vm2, %v836_v54 }
 0xdc6   :  { %987 = vmatpush1.bf16.msra.mxu0 %v1925_v18  ;;  %1018 = vmatprep.mubr.bf16.mxu0 %v1845_v20 }
 0xdc7   :  { %988 = vmatprep.subr.bf16.mxu0 %v1930_v19 }
 0xdca   :  { %989 = vmatpush1.bf16.msra.mxu0 %v1938_v21 }
 0xdcb   :  { %1132 = vmatprep.subr.bf16.mxu0 %v1920_v17 }
 0xdcc   :  { %v885_v55 = vpop.permute.xlu1 %884 }
 0xdcd   :  { %1632 = vmatmul.mubr.msk.bf16.vlgmr.msra.gmra.mrb[20].mxu1 %vm238_vm2, %v885_v55 }
 0xdce   :  { %1636 = vmatpush3.bf16.msra.mxu1 %v1953_v27  ;;  %1639 = vmatprep.mubr.msk.bf16.mxu1 %vm1847_vm3, %v1846_v23 }
 0xdcf   :  { %1637 = vmatprep.subr.bf16.mxu1 %v1846_v23 }
 0xdd2   :  { %1638 = vmatpush3.bf16.msra.mxu1 %v1960_v29 }
 0xdd3   :  { %1643 = vmatprep.subr.bf16.mxu1 %v1846_v23 }
 0xe98   :  { %v874_v57 = vpop.f32.mrb[20].mxu0 }
 0xe99   :  { %v954_v58 = vadd.f32 %v874_v57, %v168_v56  ;;  %v876_v60 = vpop.f32.mrb[21].mxu0 }
 0xe9a   :  { %v878_v61 = vpop.f32.mrb[22].mxu0  ;;  %v881_v1 = vadd.f32 %v1978_v36, %v876_v60 }
 0xe9b   :  { %1763 = vtanh.f32 %v954_v58  ;;  %v879_v63 = vpop.f32.mrb[23].mxu0  ;;  %v1529_v16 = vmul.f32 -1.442695, %v954_v58 }
 0xea0   :  { %v923_v0 = vpop.f32.mrb[20].mxu1 }
 0xea1   :  { %v929_v2 = vadd.f32 %v923_v0, %v881_v1  ;;  %v1633_v4 = vpop.f32.mrb[21].mxu1 }
 0xea2   :  { %v926_v59 = vpop.f32.mrb[22].mxu1 }
 0xea3   :  { %1765 = vtanh.f32 %v929_v2  ;;  %v1634_v5 = vpop.f32.mrb[23].mxu1  ;;  %v1528_v8 = vmul.f32 -1.442695, %v929_v2 }
 0xea4   :  { %1767 = vpow2.f32 %v1529_v16 }
 0xea5   :  { %v1764_v6 = vpop.eup %1763  ;;  %1769 = vpow2.f32 %v1528_v8 }
 0xea6   :  { %964 = vrot.lane.b32.xlu0 %v1764_v6, %s1843_s1 }
 0xead   :  { %v1766_v7 = vpop.eup %1765 }
 0xeae   :  { %939 = vrot.lane.b32.xlu1 %v1766_v7, %s1843_s1  ;;  %v1768_v62 = vpop.eup %1767 }
 0xeaf   :  { %v958_v9 = vadd.f32 1.0, %v1768_v62  ;;  %v1770_v10 = vpop.eup %1769 }
 0xeb0   :  { %v933_v11 = vadd.f32 1.0, %v1770_v10 }
 0xeb1   :  { %1771 = vrcp.f32 %v958_v9 }
 0xeb2   :  { %1773 = vrcp.f32 %v933_v11 }
 0xebb   :  { %v1772_v12 = vpop.eup %1771 }
 0xebc   :  { %v1774_v26 = vpop.eup %1773  ;;  %v962_v30 = vmul.f32 %v1772_v12, %v2115_v42 }
 0xebd   :  { %v937_v33 = vmul.f32 %v1774_v26, %v2119_v45 }
 0xf18   :  { %v965_v13 = vpop.permute.xlu0 %964 }
 0xf19   :  { %v967_v15 = vmul.f32 %v1772_v12, %v965_v13 }
 0xf1b   :  { %969 = vrot.lane.b32.xlu0 %v967_v15, %s1844_s13 }
 0xf20   :  { %v940_v22 = vpop.permute.xlu1 %939 }
 0xf21   :  { %v942_v28 = vmul.f32 %v1774_v26, %v940_v22 }
 0xf23   :  { %944 = vrot.lane.b32.xlu1 %v942_v28, %s1844_s13 }
 0xf8d   :  { %v970_v31 = vpop.permute.xlu0 %969 }
 0xf8e   :  { %v2147_v32 = vadd.f32 %v970_v31, %v962_v30 }
 0xf90   :  { %1775 = vtanh.f32 %v2147_v32 }
 0xf95   :  { %v945_v34 = vpop.permute.xlu1 %944 }
 0xf96   :  { %v2151_v35 = vadd.f32 %v945_v34, %v937_v33 }
 0xf98   :  { %1777 = vtanh.f32 %v2151_v35 }
 0xf9a   :  { %v1776_v37 = vpop.eup %1775 }
 0xf9b   :  { %975 = vrot.lane.b32.xlu0 %v1776_v37, %s1843_s1 }
 0xfa2   :  { %v1778_v14 = vpop.eup %1777 }
 0xfa3   :  { %950 = vrot.lane.b32.xlu1 %v1778_v14, %s1843_s1 }
0x100d   :  { %v976_v38 = vpop.permute.xlu0 %975 }
0x100e   :  { %v978_v39 = vmul.f32 %v1772_v12, %v976_v38 }
0x1010   :  { %v979_v40 = vpack.c.bf16 %v978_v39, %v978_v39 }
0x1012   :  { %981 = vrot.lane.b32.xlu0 %v979_v40, %s1844_s13 }
0x1015   :  { %v951_v41 = vpop.permute.xlu1 %950 }
0x1016   :  { %v953_v42 = vmul.f32 %v1774_v26, %v951_v41 }
0x1018   :  { %v1028_v43 = vpack.c.bf16 %v953_v42, %v953_v42 }
0x101a   :  { %1030 = vrot.lane.b32.xlu1 %v1028_v43, %s1844_s13 }
0x1084   :  { %v982_v44 = vpop.permute.xlu0 %981 }
0x1085   :  { %1530 = vmatmul.mubr.msk.bf16.vlgmr.msra.gmra.mrb[24].mxu0 %vm238_vm2, %v982_v44 }
0x1086   :  { %1133 = vmatpush1.bf16.msra.mxu0 %v1925_v18  ;;  %1164 = vmatprep.mubr.bf16.mxu0 %v1845_v20 }
0x1087   :  { %1134 = vmatprep.subr.bf16.mxu0 %v1930_v19 }
0x108a   :  { %1135 = vmatpush1.bf16.msra.mxu0 %v1938_v21 }
0x108b   :  { %1278 = vmatprep.subr.bf16.mxu0 %v1920_v17 }
0x108c   :  { %v1031_v45 = vpop.permute.xlu1 %1030 }
0x108d   :  { %1640 = vmatmul.mubr.msk.bf16.vlgmr.msra.gmra.mrb[24].mxu1 %vm238_vm2, %v1031_v45 }
0x108e   :  { %1644 = vmatpush3.bf16.msra.mxu1 %v1953_v27  ;;  %1647 = vmatprep.mubr.msk.bf16.mxu1 %vm1847_vm3, %v1846_v23 }
0x108f   :  { %1645 = vmatprep.subr.bf16.mxu1 %v1846_v23 }
0x1092   :  { %1646 = vmatpush3.bf16.msra.mxu1 %v1960_v29 }
0x1093   :  { %1651 = vmatprep.subr.bf16.mxu1 %v1846_v23 }
0x1158   :  { %v1020_v47 = vpop.f32.mrb[24].mxu0 }
0x1159   :  { %v1100_v48 = vadd.f32 %v1020_v47, %v173_v46  ;;  %v1022_v17 = vpop.f32.mrb[25].mxu0 }
0x115a   :  { %v1024_v49 = vpop.f32.mrb[26].mxu0  ;;  %v1027_v51 = vadd.f32 %v1978_v36, %v1022_v17 }
0x115b   :  { %1779 = vtanh.f32 %v1100_v48  ;;  %v1025_v50 = vpop.f32.mrb[27].mxu0  ;;  %v1533_v25 = vmul.f32 -1.442695, %v1100_v48 }
0x1160   :  { %v1069_v52 = vpop.f32.mrb[24].mxu1 }
0x1161   :  { %v1075_v53 = vadd.f32 %v1069_v52, %v1027_v51  ;;  %v1641_v54 = vpop.f32.mrb[25].mxu1 }
0x1162   :  { %v1072_v55 = vpop.f32.mrb[26].mxu1 }
0x1163   :  { %1781 = vtanh.f32 %v1075_v53  ;;  %v1642_v56 = vpop.f32.mrb[27].mxu1  ;;  %v1532_v60 = vmul.f32 -1.442695, %v1075_v53 }
0x1164   :  { %1783 = vpow2.f32 %v1533_v25 }
0x1165   :  { %v1780_v57 = vpop.eup %1779  ;;  %1785 = vpow2.f32 %v1532_v60 }
0x1166   :  { %1110 = vrot.lane.b32.xlu0 %v1780_v57, %s1843_s1 }
0x116d   :  { %v1782_v58 = vpop.eup %1781 }
0x116e   :  { %1085 = vrot.lane.b32.xlu1 %v1782_v58, %s1843_s1  ;;  %v1784_v61 = vpop.eup %1783 }
0x116f   :  { %v1104_v63 = vadd.f32 1.0, %v1784_v61  ;;  %v1786_v1 = vpop.eup %1785 }
0x1170   :  { %v1079_v0 = vadd.f32 1.0, %v1786_v1 }
0x1171   :  { %1787 = vrcp.f32 %v1104_v63 }
0x1172   :  { %1789 = vrcp.f32 %v1079_v0 }
0x117b   :  { %v1788_v2 = vpop.eup %1787 }
0x117c   :  { %v1790_v5 = vpop.eup %1789  ;;  %v1108_v16 = vmul.f32 %v1788_v2, %v2147_v32 }
0x117d   :  { %v1083_v9 = vmul.f32 %v1790_v5, %v2151_v35 }
0x11d8   :  { %v1111_v4 = vpop.permute.xlu0 %1110 }
0x11d9   :  { %v1113_v59 = vmul.f32 %v1788_v2, %v1111_v4 }
0x11db   :  { %1115 = vrot.lane.b32.xlu0 %v1113_v59, %s1844_s13 }
0x11e0   :  { %v1086_v6 = vpop.permute.xlu1 %1085 }
0x11e1   :  { %v1088_v7 = vmul.f32 %v1790_v5, %v1086_v6 }
0x11e3   :  { %1090 = vrot.lane.b32.xlu1 %v1088_v7, %s1844_s13 }
0x124d   :  { %v1116_v8 = vpop.permute.xlu0 %1115 }
0x124e   :  { %v2179_v62 = vadd.f32 %v1116_v8, %v1108_v16 }
0x1250   :  { %1791 = vtanh.f32 %v2179_v62 }
0x1255   :  { %v1091_v10 = vpop.permute.xlu1 %1090 }
0x1256   :  { %v2183_v11 = vadd.f32 %v1091_v10, %v1083_v9 }
0x1258   :  { %1793 = vtanh.f32 %v2183_v11 }
0x125a   :  { %v1792_v12 = vpop.eup %1791 }
0x125b   :  { %1121 = vrot.lane.b32.xlu0 %v1792_v12, %s1843_s1 }
0x1262   :  { %v1794_v13 = vpop.eup %1793 }
0x1263   :  { %1096 = vrot.lane.b32.xlu1 %v1794_v13, %s1843_s1 }
0x12cd   :  { %v1122_v15 = vpop.permute.xlu0 %1121 }
0x12ce   :  { %v1124_v26 = vmul.f32 %v1788_v2, %v1122_v15 }
0x12d0   :  { %v1125_v22 = vpack.c.bf16 %v1124_v26, %v1124_v26 }
0x12d2   :  { %1127 = vrot.lane.b32.xlu0 %v1125_v22, %s1844_s13 }
0x12d5   :  { %v1097_v28 = vpop.permute.xlu1 %1096 }
0x12d6   :  { %v1099_v30 = vmul.f32 %v1790_v5, %v1097_v28 }
0x12d8   :  { %v1174_v31 = vpack.c.bf16 %v1099_v30, %v1099_v30 }
0x12da   :  { %1176 = vrot.lane.b32.xlu1 %v1174_v31, %s1844_s13 }
0x1344   :  { %v1128_v32 = vpop.permute.xlu0 %1127 }
0x1345   :  { %1534 = vmatmul.mubr.msk.bf16.vlgmr.msra.gmra.mrb[28].mxu0 %vm238_vm2, %v1128_v32  ;;  %v1391_v32 = vld [vmem:[%s2257_s6] sm:$0xff] }
0x1346   :  { %1279 = vmatpush1.bf16.msra.mxu0 %v1925_v18  ;;  %1310 = vmatprep.mubr.bf16.mxu0 %v1845_v20  ;;  %v178_v18 = vadd.f32 %v2027_v24, %v1909_v3 }
0x1347   :  { %1280 = vmatprep.subr.bf16.mxu0 %v1930_v19 }
0x134a   :  { %1281 = vmatpush1.bf16.msra.mxu0 %v1938_v21 }
0x134c   :  { %v1177_v33 = vpop.permute.xlu1 %1176 }
0x134d   :  { %1648 = vmatmul.mubr.msk.bf16.vlgmr.msra.gmra.mrb[28].mxu1 %vm238_vm2, %v1177_v33  ;;  %v1392_v33 = vld [vmem:[%s2257_s6 + $0x8] sm:$0xff] }
0x134e   :  { %1652 = vmatpush3.bf16.msra.mxu1 %v1953_v27  ;;  %1655 = vmatprep.mubr.msk.bf16.mxu1 %vm1847_vm3, %v1846_v23 }
0x134f   :  { %1653 = vmatprep.subr.bf16.mxu1 %v1846_v23 }
0x1352   :  { %1654 = vmatpush3.bf16.msra.mxu1 %v1960_v29 }
0x1418   :  { %v1166_v20 = vpop.f32.mrb[28].mxu0 }
0x1419   :  { %v1246_v34 = vadd.f32 %v1166_v20, %v178_v18  ;;  %v1168_v19 = vpop.f32.mrb[29].mxu0  ;;  %v1393_v18 = vld [vmem:[%s2257_s6 + $0x10] sm:$0xff]  ;;  %v1848_v20 = vmov 0.0|0.0  }
0x141a   :  { %v1170_v35 = vpop.f32.mrb[30].mxu0  ;;  %v1173_v37 = vadd.f32 %v1978_v36, %v1168_v19  ;;  %1670 = vmatprep.subr.bf16.mxu0 %v1848_v20  ;;  %v1394_v19 = vld [vmem:[%s2257_s6 + $0x18] sm:$0xff]  ;;  %s1485_s6 = sshll.u32 %s1849_s22, 4  ;;  %s1486_s6 = int_to_ptr.vmem [resolvable:$true] %s1485_s6 }
0x141b   :  { %1795 = vtanh.f32 %v1246_v34  ;;  %v1171_v21 = vpop.f32.mrb[31].mxu0  ;;  %v1537_v3 = vmul.f32 -1.442695, %v1246_v34  ;;  %v1671_v34 = vpack.c.bf16 %v1392_v33, %v1391_v32  ;;  %v1674_v35 = vpack.c.bf16 %v1394_v19, %v1393_v18  ;;  %p1824_p1 = scmp.lt.s32.totalorder %s1486_s6, %s1486_s6 }
0x1420   :  { %v1215_v14 = vpop.f32.mrb[28].mxu1 }
0x1421   :  { %v1221_v27 = vadd.f32 %v1215_v14, %v1173_v37  ;;  %v1649_v38 = vpop.f32.mrb[29].mxu1 }
0x1422   :  { %v1218_v39 = vpop.f32.mrb[30].mxu1  ;;  %v1541_v38 = vld [vmem:[%s2258_s7] ss:$0 sm:$0xff] }
0x1423   :  { %1797 = vtanh.f32 %v1221_v27  ;;  %v1650_v40 = vpop.f32.mrb[31].mxu1  ;;  %v1536_v24 = vmul.f32 -1.442695, %v1221_v27 }
0x1424   :  { %1799 = vpow2.f32 %v1537_v3 }
0x1425   :  { %v1796_v41 = vpop.eup %1795  ;;  %1801 = vpow2.f32 %v1536_v24 }
0x1426   :  { %1256 = vrot.lane.b32.xlu0 %v1796_v41, %s1843_s1 }
0x142d   :  { %v1798_v29 = vpop.eup %1797 }
0x142e   :  { %1231 = vrot.lane.b32.xlu1 %v1798_v29, %s1843_s1  ;;  %v1800_v42 = vpop.eup %1799 }
0x142f   :  { %v1250_v43 = vadd.f32 1.0, %v1800_v42  ;;  %v1802_v44 = vpop.eup %1801 }
0x1430   :  { %v1225_v45 = vadd.f32 1.0, %v1802_v44 }
0x1431   :  { %1803 = vrcp.f32 %v1250_v43 }
0x1432   :  { %1805 = vrcp.f32 %v1225_v45 }
0x143b   :  { %v1804_v46 = vpop.eup %1803 }
0x143c   :  { %v1806_v17 = vpop.eup %1805  ;;  %v1254_v51 = vmul.f32 %v1804_v46, %v2179_v62 }
0x143d   :  { %v1229_v54 = vmul.f32 %v1806_v17, %v2183_v11 }
0x1498   :  { %v1257_v47 = vpop.permute.xlu0 %1256 }
0x1499   :  { %v1259_v48 = vmul.f32 %v1804_v46, %v1257_v47 }
0x149b   :  { %1261 = vrot.lane.b32.xlu0 %v1259_v48, %s1844_s13 }
0x14a0   :  { %v1232_v49 = vpop.permute.xlu1 %1231 }
0x14a1   :  { %v1234_v50 = vmul.f32 %v1806_v17, %v1232_v49 }
0x14a3   :  { %1236 = vrot.lane.b32.xlu1 %v1234_v50, %s1844_s13 }
0x150d   :  { %v1262_v52 = vpop.permute.xlu0 %1261 }
0x150e   :  { %v1264_v53 = vadd.f32 %v1262_v52, %v1254_v51 }
0x1510   :  { %1807 = vtanh.f32 %v1264_v53 }
0x1515   :  { %v1237_v55 = vpop.permute.xlu1 %1236 }
0x1516   :  { %v1239_v56 = vadd.f32 %v1237_v55, %v1229_v54 }
0x1518   :  { %1809 = vtanh.f32 %v1239_v56 }
0x151a   :  { %v1808_v57 = vpop.eup %1807 }
0x151b   :  { %1267 = vrot.lane.b32.xlu0 %v1808_v57, %s1843_s1 }
0x1522   :  { %v1810_v58 = vpop.eup %1809 }
0x1523   :  { %1242 = vrot.lane.b32.xlu1 %v1810_v58, %s1843_s1 }
0x158d   :  { %v1268_v25 = vpop.permute.xlu0 %1267 }
0x158e   :  { %v1270_v60 = vmul.f32 %v1804_v46, %v1268_v25 }
0x1590   :  { %v1271_v61 = vpack.c.bf16 %v1270_v60, %v1270_v60 }
0x1592   :  { %1273 = vrot.lane.b32.xlu0 %v1271_v61, %s1844_s13 }
0x1595   :  { %v1243_v63 = vpop.permute.xlu1 %1242 }
0x1596   :  { %v1245_v1 = vmul.f32 %v1806_v17, %v1243_v63 }
0x1598   :  { %v1319_v0 = vpack.c.bf16 %v1245_v1, %v1245_v1 }
0x159a   :  { %1321 = vrot.lane.b32.xlu1 %v1319_v0, %s1844_s13 }
0x1604   :  { %v1274_v2 = vpop.permute.xlu0 %1273 }
0x1605   :  { %1538 = vmatmul.mubr.msk.bf16.vlgmr.msra.gmra.mrb[32].mxu0 %vm238_vm2, %v1274_v2 }
0x1606   :  { %1667 = vmatprep.mubr.msk.f32.mxu0 %vm1847_vm3, %v1846_v23  ;;  %1672 = vmatpush3.bf16.msra.mxu0 %v1671_v34 }
0x1607   :  { %1673 = vmatprep.subr.bf16.mxu0 %v1848_v20 }
0x160a   :  { %1675 = vmatpush3.bf16.msra.mxu0 %v1674_v35 }
0x160c   :  { %v1322_v4 = vpop.permute.xlu1 %1321 }
0x160d   :  { %1656 = vmatmul.mubr.msk.bf16.vlgmr.msra.gmra.mrb[32].mxu1 %vm238_vm2, %v1322_v4 }
0x16d8   :  { %v1312_v59 = vpop.f32.mrb[32].mxu0 }
0x16d9   :  { %v1313_v5 = vpop.f32.mrb[33].mxu0 }
0x16da   :  { %v1315_v6 = vpop.f32.mrb[34].mxu0  ;;  %v1318_v16 = vadd.f32 %v1978_v36, %v1313_v5 }
0x16db   :  { %v1316_v7 = vpop.f32.mrb[35].mxu0 }
0x16e0   :  { %v1360_v8 = vpop.f32.mrb[32].mxu1 }
0x16e1   :  { %v1366_v62 = vadd.f32 %v1360_v8, %v1318_v16  ;;  %v1657_v9 = vpop.f32.mrb[33].mxu1 }
0x16e2   :  { %v1363_v10 = vpop.f32.mrb[34].mxu1 }
0x16e3   :  { %1811 = vtanh.f32 %v1366_v62  ;;  %v1658_v11 = vpop.f32.mrb[35].mxu1  ;;  %v1540_v13 = vmul.f32 -1.442695, %v1366_v62 }
0x16e5   :  { %1813 = vpow2.f32 %v1540_v13 }
0x16ed   :  { %v1812_v12 = vpop.eup %1811 }
0x16ee   :  { %1376 = vrot.lane.b32.xlu0 %v1812_v12, %s1843_s1 }
0x16ef   :  { %v1814_v23 = vpop.eup %1813 }
0x16f0   :  { %v1370_v15 = vadd.f32 1.0, %v1814_v23 }
0x16f2   :  { %1815 = vrcp.f32 %v1370_v15 }
0x16fc   :  { %v1816_v26 = vpop.eup %1815 }
0x16fd   :  { %v1374_v36 = vmul.f32 %v1816_v26, %v1239_v56 }
0x1760   :  { %v1377_v22 = vpop.permute.xlu0 %1376 }
0x1761   :  { %v1379_v28 = vmul.f32 %v1816_v26, %v1377_v22 }
0x1763   :  { %1381 = vrot.lane.b32.xlu1 %v1379_v28, %s1844_s13 }
0x17d5   :  { %v1382_v30 = vpop.permute.xlu1 %1381 }
0x17d6   :  { %v1384_v31 = vadd.f32 %v1382_v30, %v1374_v36 }
0x17d8   :  { %1817 = vtanh.f32 %v1384_v31 }
0x17e2   :  { %v1818_v21 = vpop.eup %1817 }
0x17e3   :  { %1387 = vrot.lane.b32.xlu0 %v1818_v21, %s1843_s1  ;;  %s1819_s1 = scalar_lea.vmem %s1486_s6, 32 }
0x17e4   :  { %p1820_p0 = scmp.ne.s32.totalorder %s1486_s6, %s1819_s1  ;;  %p1825_p2 = scmp.lt.s32.totalorder %s1819_s1, %s1819_s1 }
0x17e6   :  { %p1826_p3 = por %p1825_p2, %p1824_p1 }
0x17e8   :  { %p1827_p4 = pnand %p1826_p3, %p1820_p0 }
0x1855   :  { %v1388_v37 = vpop.permute.xlu0 %1387 }
0x1856   :  { %v1390_v14 = vmul.f32 %v1816_v26, %v1388_v37 }
0x1858   :  { %1403 = vrot.lane.b32.xlu1 %v1390_v14, %s1844_s13 }
0x18ca   :  { %v1404_v27 = vpop.permute.xlu1 %1403 }
0x18cb   :  { %1668 = vmatmul.mubr.msk.f32.vlgmr.msra.gmra.mrb[36].mxu0 %vm238_vm2, %v1404_v27 }
0x199e   :  { %v1473_v39 = vpop.f32.mrb[36].mxu0 }
0x199f   :  { %v1474_v40 = vadd.f32 %v1541_v38, %v1473_v39  ;;  %v1669_v41 = vpop.f32.mrb[37].mxu0 }
0x19a1   :  { %1478 = vst.msk [vmem:[#allocation2] sm:$0x3] %vm1477_vm4, %v1474_v40 }
0x19a2   :  { %1830 = shalt.err (!%p1827_p4)
}
0x19a3   :  { %s1831_s4 = scalar_lea.hbm %s2259_s8, 32 }
0x19a4   :  { %p1832_p5 = scmp.ne.s32.totalorder %s2259_s8, %s1831_s4  ;;  %p1835_p6 = scmp.lt.u32.totalorder %s1831_s4, %s2259_s8 }
0x19a6   :  { %p1837_p7 = pnand %p1835_p6, %p1832_p5 }
0x19a8   :  { %1840 = shalt.err (!%p1837_p7)
}
0x19a9   :  { %1488 = dma.vmem_to_hbm [thread:$0]  %s1486_s6, 32, %s2259_s8, [#allocation3]  }
0x19aa   :  { %1841 = dma.done.wait [#allocation3], 32  }
0x19ab   :  { %1842 = vsyncadd [#allocation3], 4294967264 }
0x19ac   :  { %1492 = vsyncpa [#allocation3], 1 }

</bundles_post_ra>
